<compile_context>
chip_gen: v7x
topology: tpu7x:2x2x1
jax: 0.10.0
libtpu: 0.0.40
codegen_flags: <defaults>
</compile_context>

<pallas_src>
import functools
import math

import numpy as np
import jax
import jax.numpy as jnp
from jax.experimental import pallas as pl
from jax.experimental.pallas import tpu as pltpu


# ----------------------------- helpers -----------------------------

def _pick_tile(dim, pref, align):
    """Largest tile <= pref that is a multiple of `align` and divides `dim`;
    falls back to the full dim (always a legal block)."""
    if dim <= pref:
        return dim
    t = (pref // align) * align
    while t >= align:
        if dim % t == 0:
            return t
        t -= align
    return dim


# ----------------------------- Pallas kernels -----------------------------

def ln_matmul_kernel(x_ref, lnw_ref, lnb_ref, w_ref, b_ref, o_ref, *, eps, gelu):
    """LayerNorm (f32) fused with a [tm, D] x [D, tn] matmul (bf16 MXU, f32 acc)."""
    x = x_ref[...].astype(jnp.float32)
    mean = jnp.mean(x, axis=-1, keepdims=True)
    xc = x - mean
    var = jnp.mean(xc * xc, axis=-1, keepdims=True)
    ln = xc * jax.lax.rsqrt(var + eps) * lnw_ref[...] + lnb_ref[...]
    y = jnp.dot(ln.astype(jnp.bfloat16), w_ref[...],
                preferred_element_type=jnp.float32)
    y = y + b_ref[...]
    if gelu:  # gelu_new (tanh approximation) — Phi-2's activation
        c = math.sqrt(2.0 / math.pi)
        y = 0.5 * y * (1.0 + jnp.tanh(c * (y + 0.044715 * y * y * y)))
    o_ref[...] = y.astype(o_ref.dtype)


def matmul_acc_kernel(x_ref, w_ref, b_ref, r_ref, o_ref, acc_ref):
    """K-tiled matmul with f32 accumulator; epilogue fuses bias + residual add."""
    k = pl.program_id(2)

    @pl.when(k == 0)
    def _():
        acc_ref[...] = jnp.zeros_like(acc_ref)

    acc_ref[...] += jnp.dot(x_ref[...], w_ref[...],
                            preferred_element_type=jnp.float32)

    @pl.when(k == pl.num_programs(2) - 1)
    def _():
        o_ref[...] = (acc_ref[...] + b_ref[...] + r_ref[...]).astype(o_ref.dtype)


def flash_attn_kernel(q_ref, k_ref, v_ref, rotq_ref, rotk_ref, o_ref,
                      m_ref, l_ref, acc_ref, qs_ref, *, scale, rotary_dim):
    """One (batch, head, q-tile, kv-tile) step of causal flash attention with
    in-kernel partial rotary embedding (lane slices, no permutation matmul).
    The rotated+scaled q tile is cached in bf16 VMEM scratch at kv==0 so it is
    not recomputed on every kv step."""
    tq = q_ref.shape[0]
    tkv = k_ref.shape[0]
    qi = pl.program_id(2)
    kv = pl.program_id(3)
    q_start = qi * tq
    kv_start = kv * tkv
    half = rotary_dim // 2

    def rotate(x, tab_ref):
        # tab_ref: [2, T, hd] = (cos padded with 1, sin padded with 0)
        cos = tab_ref[0]
        sin = tab_ref[1]
        hd = x.shape[-1]
        pieces = [x[:, half:rotary_dim], x[:, :half]]
        if rotary_dim < hd:
            pieces.append(x[:, rotary_dim:])   # content irrelevant (sin = 0)
        tmp = jnp.concatenate(pieces, axis=-1)
        return x * cos + tmp * sin

    @pl.when(kv == 0)
    def _():
        m_ref[...] = jnp.full(m_ref.shape, -1e30, jnp.float32)
        l_ref[...] = jnp.zeros(l_ref.shape, jnp.float32)
        acc_ref[...] = jnp.zeros(acc_ref.shape, jnp.float32)
        # rotary + softmax scale on q, hoisted out of the kv loop
        qs_ref[...] = (rotate(q_ref[...].astype(jnp.float32), rotq_ref)
                       * scale).astype(jnp.bfloat16)

    # Skip kv tiles that lie entirely in the causally-masked future.
    @pl.when(kv_start <= q_start + tq - 1)
    def _():
        k = rotate(k_ref[...].astype(jnp.float32), rotk_ref)

        s = jax.lax.dot_general(
            qs_ref[...], k.astype(jnp.bfloat16),
            (((1,), (1,)), ((), ())),
            preferred_element_type=jnp.float32)                 # [tq, tkv]

        row = q_start + jax.lax.broadcasted_iota(jnp.int32, s.shape, 0)
        col = kv_start + jax.lax.broadcasted_iota(jnp.int32, s.shape, 1)
        s = jnp.where(col <= row, s, -1e30)                     # causal mask

        m_prev = m_ref[...]
        m_new = jnp.maximum(m_prev, jnp.max(s, axis=-1, keepdims=True))
        alpha = jnp.exp(m_prev - m_new)
        p = jnp.exp(s - m_new)
        l_ref[...] = alpha * l_ref[...] + jnp.sum(p, axis=-1, keepdims=True)
        # TODO(synk): attention dropout (attn_pdrop) not implemented; assumed 0.0.
        acc_ref[...] = alpha * acc_ref[...] + jnp.dot(
            p.astype(jnp.bfloat16), v_ref[...],
            preferred_element_type=jnp.float32)
        m_ref[...] = m_new

    @pl.when(kv == pl.num_programs(3) - 1)
    def _():
        o_ref[...] = (acc_ref[...] *
                      pl.reciprocal(l_ref[...], approx=True)).astype(o_ref.dtype)


# ----------------------------- Pallas wrappers -----------------------------

def _ln_matmul(x2d, lnw, lnb, w_bf16, b, *, eps, gelu, tm, tn, out_dtype):
    M, D = x2d.shape
    N = w_bf16.shape[1]
    tm = _pick_tile(M, tm, 8)
    tn = _pick_tile(N, tn, 128)
    return pl.pallas_call(
        functools.partial(ln_matmul_kernel, eps=eps, gelu=gelu),
        out_shape=jax.ShapeDtypeStruct((M, N), out_dtype),
        grid=(M // tm, N // tn),
        in_specs=[pl.BlockSpec((tm, D), lambda i, j: (i, 0)),
                  pl.BlockSpec((1, D), lambda i, j: (0, 0)),
                  pl.BlockSpec((1, D), lambda i, j: (0, 0)),
                  pl.BlockSpec((D, tn), lambda i, j: (0, j)),
                  pl.BlockSpec((1, tn), lambda i, j: (0, j))],
        out_specs=pl.BlockSpec((tm, tn), lambda i, j: (i, j)),
        compiler_params=pltpu.CompilerParams(
            dimension_semantics=("parallel", "parallel")),
    )(x2d, lnw[None, :], lnb[None, :], w_bf16, b[None, :])


def _flash_attention(qkv5, rot_tab, *, rotary_dim, tq, tkv):
    _, B, H, S, hd = qkv5.shape
    tq = _pick_tile(S, tq, 8)
    tkv = _pick_tile(S, tkv, 8)
    scale = 1.0 / math.sqrt(hd)
    return pl.pallas_call(
        functools.partial(flash_attn_kernel, scale=scale, rotary_dim=rotary_dim),
        out_shape=jax.ShapeDtypeStruct((B, H, S, hd), jnp.bfloat16),
        grid=(B, H, S // tq, S // tkv),
        in_specs=[
            pl.BlockSpec((None, None, None, tq, hd),
                         lambda b, h, qi, kv: (0, b, h, qi, 0)),   # q
            pl.BlockSpec((None, None, None, tkv, hd),
                         lambda b, h, qi, kv: (1, b, h, kv, 0)),   # k
            pl.BlockSpec((None, None, None, tkv, hd),
                         lambda b, h, qi, kv: (2, b, h, kv, 0)),   # v
            pl.BlockSpec((2, tq, hd), lambda b, h, qi, kv: (0, qi, 0)),   # rot (q rows)
            pl.BlockSpec((2, tkv, hd), lambda b, h, qi, kv: (0, kv, 0)),  # rot (kv rows)
        ],
        out_specs=pl.BlockSpec((None, None, tq, hd),
                               lambda b, h, qi, kv: (b, h, qi, 0)),
        scratch_shapes=[pltpu.VMEM((tq, 1), jnp.float32),     # m
                        pltpu.VMEM((tq, 1), jnp.float32),     # l
                        pltpu.VMEM((tq, hd), jnp.float32),    # acc
                        pltpu.VMEM((tq, hd), jnp.bfloat16)],  # rotated+scaled q
        compiler_params=pltpu.CompilerParams(
            dimension_semantics=("parallel", "parallel", "parallel", "arbitrary")),
    )(qkv5, qkv5, qkv5, rot_tab, rot_tab)


def _attn_out_proj(attn_bhsd, wo_heads_bf16, bo, resid2d, *, tn):
    """out = sum_h attn[:, h] @ wo_heads[h] + bo + resid  (heads = reduction axis)."""
    B, H, S, hd = attn_bhsd.shape
    D = wo_heads_bf16.shape[-1]
    tn = _pick_tile(D, tn, 128)
    return pl.pallas_call(
        matmul_acc_kernel,
        out_shape=jax.ShapeDtypeStruct((B * S, D), jnp.float32),
        grid=(B, D // tn, H),
        in_specs=[pl.BlockSpec((None, None, S, hd), lambda b, j, h: (b, h, 0, 0)),
                  pl.BlockSpec((None, hd, tn), lambda b, j, h: (h, 0, j)),
                  pl.BlockSpec((1, tn), lambda b, j, h: (0, j)),
                  pl.BlockSpec((S, tn), lambda b, j, h: (b, j))],
        out_specs=pl.BlockSpec((S, tn), lambda b, j, h: (b, j)),
        scratch_shapes=[pltpu.VMEM((S, tn), jnp.float32)],
        compiler_params=pltpu.CompilerParams(
            dimension_semantics=("parallel", "parallel", "arbitrary")),
    )(attn_bhsd, wo_heads_bf16, bo[None, :], resid2d)


def _matmul_residual(x2d, w_bf16, b, resid2d, *, tm, tn, tk, out_dtype=jnp.float32):
    M, K = x2d.shape
    N = w_bf16.shape[1]
    tm = _pick_tile(M, tm, 8)
    tn = _pick_tile(N, tn, 128)
    tk = _pick_tile(K, tk, 128)
    return pl.pallas_call(
        matmul_acc_kernel,
        out_shape=jax.ShapeDtypeStruct((M, N), out_dtype),
        grid=(M // tm, N // tn, K // tk),
        in_specs=[pl.BlockSpec((tm, tk), lambda i, j, k: (i, k)),
                  pl.BlockSpec((tk, tn), lambda i, j, k: (k, j)),
                  pl.BlockSpec((1, tn), lambda i, j, k: (0, j)),
                  pl.BlockSpec((tm, tn), lambda i, j, k: (i, j))],
        out_specs=pl.BlockSpec((tm, tn), lambda i, j, k: (i, j)),
        scratch_shapes=[pltpu.VMEM((tm, tn), jnp.float32)],
        compiler_params=pltpu.CompilerParams(
            dimension_semantics=("parallel", "parallel", "arbitrary")),
    )(x2d, w_bf16, b[None, :], resid2d)


# ----------------------------- Block forward -----------------------------

def phi2_block_forward(x, p, *, n_head, rotary_dim, ln_eps,
                       tm=256, tn=256, tk=512, tq=256, tkv=512):
    """x: [B, S, D] float32."""
    B, S, D = x.shape
    H = n_head
    assert D % H == 0
    hd = D // H
    x2d = x.reshape(B * S, D)

    # --- attention branch: LayerNorm fused into the QKV projection ---
    qkv = _ln_matmul(x2d, p["ln_w"], p["ln_b"], p["wqkv"], p["bqkv"],
                     eps=ln_eps, gelu=False, tm=tm, tn=tn,
                     out_dtype=jnp.bfloat16)                        # [B*S, 3D]
    # single relayout to per-(batch, head) tiles for flash attention
    qkv5 = qkv.reshape(B, S, 3, H, hd).transpose(2, 0, 3, 1, 4)     # [3,B,H,S,hd]
    attn = _flash_attention(qkv5, p["rot_tab"][:, :S],
                            rotary_dim=rotary_dim, tq=tq, tkv=tkv)  # [B,H,S,hd]
    # out-projection reduces over heads and fuses "+ bo + residual x"
    y = _attn_out_proj(attn, p["wo_heads"], p["bo"], x2d, tn=tn)    # [B*S, D] f32

    # --- MLP branch: LayerNorm fused into fc1(+gelu); fc2 fuses "+ b2 + y" ---
    h = _ln_matmul(x2d, p["ln_w"], p["ln_b"], p["w1"], p["b1"],
                   eps=ln_eps, gelu=True, tm=tm, tn=tn,
                   out_dtype=jnp.bfloat16)                          # [B*S, 4D]
    # TODO(synk): resid_dropout / attn_pdrop are identity (p = 0 / eval mode).
    out = _matmul_residual(h, p["w2"], p["b2"], y, tm=tm, tn=tn, tk=tk)
    return out.reshape(B, S, D)


# ----------------------------- reference (pure JAX, f32) -----------------------------

def reference_block(x, p, *, n_head, rotary_dim, ln_eps):
    B, S, D = x.shape
    H = n_head
    hd = D // H
    rd = rotary_dim

    wqkv = p["wqkv"].astype(jnp.float32)
    wo = p["wo_heads"].astype(jnp.float32).reshape(D, D)
    w1 = p["w1"].astype(jnp.float32)
    w2 = p["w2"].astype(jnp.float32)

    mean = jnp.mean(x, -1, keepdims=True)
    var = jnp.mean((x - mean) ** 2, -1, keepdims=True)
    ln = (x - mean) / jnp.sqrt(var + ln_eps) * p["ln_w"] + p["ln_b"]

    qkv = ln @ wqkv + p["bqkv"]
    q, k, v = jnp.split(qkv, 3, axis=-1)
    q = q.reshape(B, S, H, hd)
    k = k.reshape(B, S, H, hd)
    v = v.reshape(B, S, H, hd).transpose(0, 2, 1, 3)

    def rot(t):  # t: [B, S, H, hd]
        tr = t[..., :rd]
        tmp = jnp.concatenate([tr[..., rd // 2:], tr[..., :rd // 2]], -1)
        c = p["cos"][None, :S, None, :]
        s = p["sin"][None, :S, None, :]
        return jnp.concatenate([tr * c + tmp * s, t[..., rd:]], -1)

    q = rot(q).transpose(0, 2, 1, 3)
    k = rot(k).transpose(0, 2, 1, 3)
    scores = jnp.einsum("bhqd,bhkd->bhqk", q, k) / math.sqrt(hd)
    mask = jnp.tril(jnp.ones((S, S), bool))
    scores = jnp.where(mask[None, None], scores, -jnp.inf)
    probs = jax.nn.softmax(scores, -1)
    out = jnp.einsum("bhqk,bhkd->bhqd", probs, v)
    out = out.transpose(0, 2, 1, 3).reshape(B, S, D)
    attn = out @ wo + p["bo"]

    h1 = ln @ w1 + p["b1"]
    c2 = math.sqrt(2.0 / math.pi)
    h1 = 0.5 * h1 * (1.0 + jnp.tanh(c2 * (h1 + 0.044715 * h1 ** 3)))
    mlp = h1 @ w2 + p["b2"]
    return x + attn + mlp


# ----------------------------- setup -----------------------------

def make_params(key, n_embd, n_head, rotary_dim, max_seq):
    D = n_embd
    hd = D // n_head
    n_inner = 4 * D
    ks = jax.random.split(key, 10)
    scale = 0.02

    # rotary cos/sin tables (sized rotary_dim on the last axis)
    inv_freq = 1.0 / (10000.0 ** (np.arange(0, rotary_dim, 2, dtype=np.float32)
                                  / rotary_dim))
    pos = np.arange(max_seq, dtype=np.float32)
    freqs = np.einsum("s,f->sf", pos, inv_freq)
    emb = np.concatenate([freqs, freqs], axis=-1)          # [max_seq, rotary_dim]
    cos = np.cos(emb).astype(np.float32)
    sin = np.sin(emb).astype(np.float32)
    # pad to head_dim: cos=1 / sin=0 beyond rotary_dim -> tail passes through
    cos_pad = np.concatenate(
        [cos, np.ones((max_seq, hd - rotary_dim), np.float32)], axis=-1)
    sin_pad = np.concatenate(
        [sin, np.zeros((max_seq, hd - rotary_dim), np.float32)], axis=-1)
    rot_tab = np.stack([cos_pad, sin_pad], axis=0)          # [2, max_seq, hd]

    wo = scale * jax.random.normal(ks[2], (D, D), jnp.float32)
    return dict(
        ln_w=1.0 + 0.1 * jax.random.normal(ks[8], (D,), jnp.float32),
        ln_b=0.1 * jax.random.normal(ks[9], (D,), jnp.float32),
        # matmul weights stored in bf16 (halves weight HBM traffic; MXU bf16)
        wqkv=(scale * jax.random.normal(ks[0], (D, 3 * D), jnp.float32)
              ).astype(jnp.bfloat16),
        bqkv=scale * jax.random.normal(ks[1], (3 * D,), jnp.float32),
        wo_heads=wo.reshape(n_head, hd, D).astype(jnp.bfloat16),
        bo=scale * jax.random.normal(ks[3], (D,), jnp.float32),
        w1=(scale * jax.random.normal(ks[4], (D, n_inner), jnp.float32)
            ).astype(jnp.bfloat16),
        b1=scale * jax.random.normal(ks[5], (n_inner,), jnp.float32),
        w2=(scale * jax.random.normal(ks[6], (n_inner, D), jnp.float32)
            ).astype(jnp.bfloat16),
        b2=scale * jax.random.normal(ks[7], (D,), jnp.float32),
        cos=jnp.asarray(cos),
        sin=jnp.asarray(sin),
        rot_tab=jnp.asarray(rot_tab),
    )


if __name__ == "__main__":
    # Small Phi-2-like config: n_embd=128, n_head=4 (head_dim=32), rotary_dim=16,
    # batch=2, seq=16.  Tile sizes chosen so the test exercises M/N/K tiling,
    # the accumulator path, multi-block flash attention and causal tile skip.
    B, S, D, H, RD = 2, 16, 128, 4, 16
    key = jax.random.PRNGKey(0)
    kx, kp = jax.random.split(key)
    x = jax.random.normal(kx, (B, S, D), jnp.float32)
    params = make_params(kp, n_embd=D, n_head=H, rotary_dim=RD, max_seq=S)

    fwd = jax.jit(functools.partial(
        phi2_block_forward, n_head=H, rotary_dim=RD, ln_eps=1e-5,
        tm=16, tn=128, tk=256, tq=8, tkv=8))
    out = jax.block_until_ready(fwd(x, params))

    ref = jax.block_until_ready(
        reference_block(x, params, n_head=H, rotary_dim=RD, ln_eps=1e-5))

    assert out.shape == (B, S, D), out.shape
    np.testing.assert_allclose(np.asarray(out), np.asarray(ref),
                               rtol=2e-2, atol=2e-2)
    print("KERNEL_OK")
</pallas_src>

<mosaic_0001>
module attributes {stable_mosaic.version = 11 : i64} {
  func.func @ln_matmul_kernel(%arg0: i32, %arg1: i32, %arg2: memref<16x128xf32, #tpu.memory_space<vmem>>, %arg3: memref<1x128xf32, #tpu.memory_space<vmem>>, %arg4: memref<1x128xf32, #tpu.memory_space<vmem>>, %arg5: memref<128x128xbf16, #tpu.memory_space<vmem>>, %arg6: memref<1x128xf32, #tpu.memory_space<vmem>>, %arg7: memref<16x128xbf16, #tpu.memory_space<vmem>>) attributes {dimension_semantics = [#tpu.dimension_semantics<parallel>, #tpu.dimension_semantics<parallel>], iteration_bounds = array<i64: 2, 3>, scalar_prefetch = 0 : i64, scratch_operands = 0 : i64, tpu.core_type = #tpu.core_type<tc>, window_params = [{transform_indices = @transform_0, window_bounds = array<i64: 16, 128>}, {pipeline_mode = #tpu.pipeline_mode<synchronous>, transform_indices = @transform_1, window_bounds = array<i64: 1, 128>}, {pipeline_mode = #tpu.pipeline_mode<synchronous>, transform_indices = @transform_2, window_bounds = array<i64: 1, 128>}, {transform_indices = @transform_3, window_bounds = array<i64: 128, 128>}, {transform_indices = @transform_4, window_bounds = array<i64: 1, 128>}, {transform_indices = @transform_5, window_bounds = array<i64: 16, 128>}]} {
    %c0 = arith.constant 0 : index
    %c0_0 = arith.constant 0 : index
    %0 = vector.load %arg2[%c0, %c0_0] : memref<16x128xf32, #tpu.memory_space<vmem>>, vector<16x128xf32>
    %cst = arith.constant dense<0.000000e+00> : vector<16xf32>
    %1 = vector.multi_reduction <add>, %0, %cst [1] : vector<16x128xf32> to vector<16xf32>
    %2 = vector.shape_cast %1 : vector<16xf32> to vector<16x1xf32>
    %cst_1 = arith.constant 1.280000e+02 : f32
    %3 = vector.broadcast %cst_1 : f32 to vector<16x1xf32>
    %4 = arith.divf %2, %3 : vector<16x1xf32>
    %5 = vector.broadcast %4 : vector<16x1xf32> to vector<16x128xf32>
    %6 = arith.subf %0, %5 : vector<16x128xf32>
    %7 = arith.mulf %6, %6 : vector<16x128xf32>
    %cst_2 = arith.constant dense<0.000000e+00> : vector<16xf32>
    %8 = vector.multi_reduction <add>, %7, %cst_2 [1] : vector<16x128xf32> to vector<16xf32>
    %9 = vector.shape_cast %8 : vector<16xf32> to vector<16x1xf32>
    %cst_3 = arith.constant 1.280000e+02 : f32
    %10 = vector.broadcast %cst_3 : f32 to vector<16x1xf32>
    %11 = arith.divf %9, %10 : vector<16x1xf32>
    %cst_4 = arith.constant 9.99999974E-6 : f32
    %12 = vector.broadcast %cst_4 : f32 to vector<16x1xf32>
    %13 = arith.addf %11, %12 : vector<16x1xf32>
    %14 = math.rsqrt %13 : vector<16x1xf32>
    %15 = vector.broadcast %14 : vector<16x1xf32> to vector<16x128xf32>
    %16 = arith.mulf %6, %15 : vector<16x128xf32>
    %c0_5 = arith.constant 0 : index
    %c0_6 = arith.constant 0 : index
    %17 = vector.load %arg3[%c0_5, %c0_6] : memref<1x128xf32, #tpu.memory_space<vmem>>, vector<1x128xf32>
    %18 = vector.broadcast %17 : vector<1x128xf32> to vector<16x128xf32>
    %19 = arith.mulf %16, %18 : vector<16x128xf32>
    %c0_7 = arith.constant 0 : index
    %c0_8 = arith.constant 0 : index
    %20 = vector.load %arg4[%c0_7, %c0_8] : memref<1x128xf32, #tpu.memory_space<vmem>>, vector<1x128xf32>
    %21 = vector.broadcast %20 : vector<1x128xf32> to vector<16x128xf32>
    %22 = arith.addf %19, %21 : vector<16x128xf32>
    %23 = arith.truncf %22 : vector<16x128xf32> to vector<16x128xbf16>
    %c0_9 = arith.constant 0 : index
    %c0_10 = arith.constant 0 : index
    %24 = vector.load %arg5[%c0_9, %c0_10] : memref<128x128xbf16, #tpu.memory_space<vmem>>, vector<128x128xbf16>
    %cst_11 = arith.constant dense<0.000000e+00> : vector<16x128xf32>
    %25 = tpu.matmul %23, %24, %cst_11 {dimension_numbers = #tpu.dot_dimension_numbers<[1], [0], [0], [1], [0, 0, 1, 1], [], []>} : vector<16x128xbf16>, vector<128x128xbf16>, vector<16x128xf32> -> vector<16x128xf32>
    %c0_12 = arith.constant 0 : index
    %c0_13 = arith.constant 0 : index
    %26 = vector.load %arg6[%c0_12, %c0_13] : memref<1x128xf32, #tpu.memory_space<vmem>>, vector<1x128xf32>
    %27 = vector.broadcast %26 : vector<1x128xf32> to vector<16x128xf32>
    %28 = arith.addf %25, %27 : vector<16x128xf32>
    %29 = arith.truncf %28 : vector<16x128xf32> to vector<16x128xbf16>
    %c0_14 = arith.constant 0 : index
    %c0_15 = arith.constant 0 : index
    %30 = vector.load %arg7[%c0_14, %c0_15] : memref<16x128xbf16, #tpu.memory_space<vmem>>, vector<16x128xbf16>
    tpu.vector_store %arg7[%c0_14, %c0_15], %29 {strides = array<i32>} : memref<16x128xbf16, #tpu.memory_space<vmem>>, vector<16x128xbf16>,
    return
  }
  func.func @transform_0(%arg0: i32, %arg1: i32) -> (i32, i32) {
    %c0_i32 = arith.constant 0 : i32
    %c0_i32_0 = arith.constant 0 : i32
    return %arg0, %c0_i32 : i32, i32
  }
  func.func @transform_1(%arg0: i32, %arg1: i32) -> (i32, i32) {
    %c0_i32 = arith.constant 0 : i32
    %c0_i32_0 = arith.constant 0 : i32
    %c0_i32_1 = arith.constant 0 : i32
    return %c0_i32, %c0_i32_0 : i32, i32
  }
  func.func @transform_2(%arg0: i32, %arg1: i32) -> (i32, i32) {
    %c0_i32 = arith.constant 0 : i32
    %c0_i32_0 = arith.constant 0 : i32
    %c0_i32_1 = arith.constant 0 : i32
    return %c0_i32, %c0_i32_0 : i32, i32
  }
  func.func @transform_3(%arg0: i32, %arg1: i32) -> (i32, i32) {
    %c0_i32 = arith.constant 0 : i32
    %c0_i32_0 = arith.constant 0 : i32
    return %c0_i32, %arg1 : i32, i32
  }
  func.func @transform_4(%arg0: i32, %arg1: i32) -> (i32, i32) {
    %c0_i32 = arith.constant 0 : i32
    %c0_i32_0 = arith.constant 0 : i32
    return %c0_i32, %arg1 : i32, i32
  }
  func.func @transform_5(%arg0: i32, %arg1: i32) -> (i32, i32) {
    %c0_i32 = arith.constant 0 : i32
    return %arg0, %arg1 : i32, i32
  }
}

module attributes {stable_mosaic.version = 11 : i64} {
  func.func @matmul_acc_kernel(%arg0: i32, %arg1: i32, %arg2: i32, %arg3: memref<1x1x16x32xbf16, #tpu.memory_space<vmem>>, %arg4: memref<1x32x128xbf16, #tpu.memory_space<vmem>>, %arg5: memref<1x128xf32, #tpu.memory_space<vmem>>, %arg6: memref<16x128xf32, #tpu.memory_space<vmem>>, %arg7: memref<16x128xf32, #tpu.memory_space<vmem>>, %arg8: memref<16x128xf32, #tpu.memory_space<vmem>>) attributes {dimension_semantics = [#tpu.dimension_semantics<parallel>, #tpu.dimension_semantics<parallel>, #tpu.dimension_semantics<arbitrary>], iteration_bounds = array<i64: 2, 1, 4>, scalar_prefetch = 0 : i64, scratch_operands = 1 : i64, tpu.core_type = #tpu.core_type<tc>, window_params = [{transform_indices = @transform_0, window_bounds = array<i64: 1, 1, 16, 32>}, {transform_indices = @transform_1, window_bounds = array<i64: 1, 32, 128>}, {transform_indices = @transform_2, window_bounds = array<i64: 1, 128>}, {transform_indices = @transform_3, window_bounds = array<i64: 16, 128>}, {transform_indices = @transform_4, window_bounds = array<i64: 16, 128>}]} {
    %c0_i32 = arith.constant 0 : i32
    %0 = arith.cmpi eq, %arg2, %c0_i32 : i32
    %1 = arith.extui %0 : i1 to i32
    %c0_i32_0 = arith.constant 0 : i32
    %2 = arith.cmpi ne, %1, %c0_i32_0 : i32
    scf.if %2 {
      %cst_12 = arith.constant 0.000000e+00 : f32
      %14 = vector.broadcast %cst_12 : f32 to vector<16x128xf32>
      %c0_13 = arith.constant 0 : index
      %c0_14 = arith.constant 0 : index
      %15 = vector.load %arg8[%c0_13, %c0_14] : memref<16x128xf32, #tpu.memory_space<vmem>>, vector<16x128xf32>
      tpu.vector_store %arg8[%c0_13, %c0_14], %14 {strides = array<i32>} : memref<16x128xf32, #tpu.memory_space<vmem>>, vector<16x128xf32>,
    } else {
    }
    %c0 = arith.constant 0 : index
    %c0_1 = arith.constant 0 : index
    %3 = vector.load %arg8[%c0, %c0_1] : memref<16x128xf32, #tpu.memory_space<vmem>>, vector<16x128xf32>
    %c0_2 = arith.constant 0 : index
    %c0_3 = arith.constant 0 : index
    %c0_4 = arith.constant 0 : index
    %c0_5 = arith.constant 0 : index
    %4 = vector.load %arg3[%c0_2, %c0_3, %c0_4, %c0_5] : memref<1x1x16x32xbf16, #tpu.memory_space<vmem>>, vector<1x1x16x32xbf16>
    %5 = vector.shape_cast %4 : vector<1x1x16x32xbf16> to vector<16x32xbf16>
    %c0_6 = arith.constant 0 : index
    %c0_7 = arith.constant 0 : index
    %c0_8 = arith.constant 0 : index
    %6 = vector.load %arg4[%c0_6, %c0_7, %c0_8] : memref<1x32x128xbf16, #tpu.memory_space<vmem>>, vector<1x32x128xbf16>
    %7 = vector.shape_cast %6 : vector<1x32x128xbf16> to vector<32x128xbf16>
    %cst = arith.constant dense<0.000000e+00> : vector<16x128xf32>
    %8 = tpu.matmul %5, %7, %cst {dimension_numbers = #tpu.dot_dimension_numbers<[1], [0], [0], [1], [0, 0, 1, 1], [], []>} : vector<16x32xbf16>, vector<32x128xbf16>, vector<16x128xf32> -> vector<16x128xf32>
    %9 = arith.addf %3, %8 : vector<16x128xf32>
    %c0_9 = arith.constant 0 : index
    %c0_10 = arith.constant 0 : index
    %10 = vector.load %arg8[%c0_9, %c0_10] : memref<16x128xf32, #tpu.memory_space<vmem>>, vector<16x128xf32>
    tpu.vector_store %arg8[%c0_9, %c0_10], %9 {strides = array<i32>} : memref<16x128xf32, #tpu.memory_space<vmem>>, vector<16x128xf32>,
    %c3_i32 = arith.constant 3 : i32
    %11 = arith.cmpi eq, %arg2, %c3_i32 : i32
    %12 = arith.extui %11 : i1 to i32
    %c0_i32_11 = arith.constant 0 : i32
    %13 = arith.cmpi ne, %12, %c0_i32_11 : i32
    scf.if %13 {
      %c0_12 = arith.constant 0 : index
      %c0_13 = arith.constant 0 : index
      %14 = vector.load %arg8[%c0_12, %c0_13] : memref<16x128xf32, #tpu.memory_space<vmem>>, vector<16x128xf32>
      %c0_14 = arith.constant 0 : index
      %c0_15 = arith.constant 0 : index
      %15 = vector.load %arg5[%c0_14, %c0_15] : memref<1x128xf32, #tpu.memory_space<vmem>>, vector<1x128xf32>
      %16 = vector.broadcast %15 : vector<1x128xf32> to vector<16x128xf32>
      %17 = arith.addf %14, %16 : vector<16x128xf32>
      %c0_16 = arith.constant 0 : index
      %c0_17 = arith.constant 0 : index
      %18 = vector.load %arg6[%c0_16, %c0_17] : memref<16x128xf32, #tpu.memory_space<vmem>>, vector<16x128xf32>
      %19 = arith.addf %17, %18 : vector<16x128xf32>
      %c0_18 = arith.constant 0 : index
      %c0_19 = arith.constant 0 : index
      %20 = vector.load %arg7[%c0_18, %c0_19] : memref<16x128xf32, #tpu.memory_space<vmem>>, vector<16x128xf32>
      tpu.vector_store %arg7[%c0_18, %c0_19], %19 {strides = array<i32>} : memref<16x128xf32, #tpu.memory_space<vmem>>, vector<16x128xf32>,
    } else {
    }
    return
  }
  func.func @transform_0(%arg0: i32, %arg1: i32, %arg2: i32) -> (i32, i32, i32, i32) {
    %c0_i32 = arith.constant 0 : i32
    %c0_i32_0 = arith.constant 0 : i32
    %c0_i32_1 = arith.constant 0 : i32
    return %arg0, %arg2, %c0_i32, %c0_i32_0 : i32, i32, i32, i32
  }
  func.func @transform_1(%arg0: i32, %arg1: i32, %arg2: i32) -> (i32, i32, i32) {
    %c0_i32 = arith.constant 0 : i32
    %c0_i32_0 = arith.constant 0 : i32
    return %arg2, %c0_i32, %arg1 : i32, i32, i32
  }
  func.func @transform_2(%arg0: i32, %arg1: i32, %arg2: i32) -> (i32, i32) {
    %c0_i32 = arith.constant 0 : i32
    %c0_i32_0 = arith.constant 0 : i32
    return %c0_i32, %arg1 : i32, i32
  }
  func.func @transform_3(%arg0: i32, %arg1: i32, %arg2: i32) -> (i32, i32) {
    %c0_i32 = arith.constant 0 : i32
    return %arg0, %arg1 : i32, i32
  }
  func.func @transform_4(%arg0: i32, %arg1: i32, %arg2: i32) -> (i32, i32) {
    %c0_i32 = arith.constant 0 : i32
    return %arg0, %arg1 : i32, i32
  }
}

module attributes {stable_mosaic.version = 11 : i64} {
  func.func @ln_matmul_kernel(%arg0: i32, %arg1: i32, %arg2: memref<16x128xf32, #tpu.memory_space<vmem>>, %arg3: memref<1x128xf32, #tpu.memory_space<vmem>>, %arg4: memref<1x128xf32, #tpu.memory_space<vmem>>, %arg5: memref<128x128xbf16, #tpu.memory_space<vmem>>, %arg6: memref<1x128xf32, #tpu.memory_space<vmem>>, %arg7: memref<16x128xbf16, #tpu.memory_space<vmem>>) attributes {dimension_semantics = [#tpu.dimension_semantics<parallel>, #tpu.dimension_semantics<parallel>], iteration_bounds = array<i64: 2, 4>, scalar_prefetch = 0 : i64, scratch_operands = 0 : i64, tpu.core_type = #tpu.core_type<tc>, window_params = [{transform_indices = @transform_0, window_bounds = array<i64: 16, 128>}, {pipeline_mode = #tpu.pipeline_mode<synchronous>, transform_indices = @transform_1, window_bounds = array<i64: 1, 128>}, {pipeline_mode = #tpu.pipeline_mode<synchronous>, transform_indices = @transform_2, window_bounds = array<i64: 1, 128>}, {transform_indices = @transform_3, window_bounds = array<i64: 128, 128>}, {transform_indices = @transform_4, window_bounds = array<i64: 1, 128>}, {transform_indices = @transform_5, window_bounds = array<i64: 16, 128>}]} {
    %c0 = arith.constant 0 : index
    %c0_0 = arith.constant 0 : index
    %0 = vector.load %arg2[%c0, %c0_0] : memref<16x128xf32, #tpu.memory_space<vmem>>, vector<16x128xf32>
    %cst = arith.constant dense<0.000000e+00> : vector<16xf32>
    %1 = vector.multi_reduction <add>, %0, %cst [1] : vector<16x128xf32> to vector<16xf32>
    %2 = vector.shape_cast %1 : vector<16xf32> to vector<16x1xf32>
    %cst_1 = arith.constant 1.280000e+02 : f32
    %3 = vector.broadcast %cst_1 : f32 to vector<16x1xf32>
    %4 = arith.divf %2, %3 : vector<16x1xf32>
    %5 = vector.broadcast %4 : vector<16x1xf32> to vector<16x128xf32>
    %6 = arith.subf %0, %5 : vector<16x128xf32>
    %7 = arith.mulf %6, %6 : vector<16x128xf32>
    %cst_2 = arith.constant dense<0.000000e+00> : vector<16xf32>
    %8 = vector.multi_reduction <add>, %7, %cst_2 [1] : vector<16x128xf32> to vector<16xf32>
    %9 = vector.shape_cast %8 : vector<16xf32> to vector<16x1xf32>
    %cst_3 = arith.constant 1.280000e+02 : f32
    %10 = vector.broadcast %cst_3 : f32 to vector<16x1xf32>
    %11 = arith.divf %9, %10 : vector<16x1xf32>
    %cst_4 = arith.constant 9.99999974E-6 : f32
    %12 = vector.broadcast %cst_4 : f32 to vector<16x1xf32>
    %13 = arith.addf %11, %12 : vector<16x1xf32>
    %14 = math.rsqrt %13 : vector<16x1xf32>
    %15 = vector.broadcast %14 : vector<16x1xf32> to vector<16x128xf32>
    %16 = arith.mulf %6, %15 : vector<16x128xf32>
    %c0_5 = arith.constant 0 : index
    %c0_6 = arith.constant 0 : index
    %17 = vector.load %arg3[%c0_5, %c0_6] : memref<1x128xf32, #tpu.memory_space<vmem>>, vector<1x128xf32>
    %18 = vector.broadcast %17 : vector<1x128xf32> to vector<16x128xf32>
    %19 = arith.mulf %16, %18 : vector<16x128xf32>
    %c0_7 = arith.constant 0 : index
    %c0_8 = arith.constant 0 : index
    %20 = vector.load %arg4[%c0_7, %c0_8] : memref<1x128xf32, #tpu.memory_space<vmem>>, vector<1x128xf32>
    %21 = vector.broadcast %20 : vector<1x128xf32> to vector<16x128xf32>
    %22 = arith.addf %19, %21 : vector<16x128xf32>
    %23 = arith.truncf %22 : vector<16x128xf32> to vector<16x128xbf16>
    %c0_9 = arith.constant 0 : index
    %c0_10 = arith.constant 0 : index
    %24 = vector.load %arg5[%c0_9, %c0_10] : memref<128x128xbf16, #tpu.memory_space<vmem>>, vector<128x128xbf16>
    %cst_11 = arith.constant dense<0.000000e+00> : vector<16x128xf32>
    %25 = tpu.matmul %23, %24, %cst_11 {dimension_numbers = #tpu.dot_dimension_numbers<[1], [0], [0], [1], [0, 0, 1, 1], [], []>} : vector<16x128xbf16>, vector<128x128xbf16>, vector<16x128xf32> -> vector<16x128xf32>
    %c0_12 = arith.constant 0 : index
    %c0_13 = arith.constant 0 : index
    %26 = vector.load %arg6[%c0_12, %c0_13] : memref<1x128xf32, #tpu.memory_space<vmem>>, vector<1x128xf32>
    %27 = vector.broadcast %26 : vector<1x128xf32> to vector<16x128xf32>
    %28 = arith.addf %25, %27 : vector<16x128xf32>
    %cst_14 = arith.constant 5.000000e-01 : f32
    %29 = vector.broadcast %cst_14 : f32 to vector<16x128xf32>
    %30 = arith.mulf %29, %28 : vector<16x128xf32>
    %cst_15 = arith.constant 4.471500e-02 : f32
    %31 = vector.broadcast %cst_15 : f32 to vector<16x128xf32>
    %32 = arith.mulf %31, %28 : vector<16x128xf32>
    %33 = arith.mulf %32, %28 : vector<16x128xf32>
    %34 = arith.mulf %33, %28 : vector<16x128xf32>
    %35 = arith.addf %28, %34 : vector<16x128xf32>
    %cst_16 = arith.constant 0.797884583 : f32
    %36 = vector.broadcast %cst_16 : f32 to vector<16x128xf32>
    %37 = arith.mulf %36, %35 : vector<16x128xf32>
    %38 = math.tanh %37 : vector<16x128xf32>
    %cst_17 = arith.constant 1.000000e+00 : f32
    %39 = vector.broadcast %cst_17 : f32 to vector<16x128xf32>
    %40 = arith.addf %39, %38 : vector<16x128xf32>
    %41 = arith.mulf %30, %40 : vector<16x128xf32>
    %42 = arith.truncf %41 : vector<16x128xf32> to vector<16x128xbf16>
    %c0_18 = arith.constant 0 : index
    %c0_19 = arith.constant 0 : index
    %43 = vector.load %arg7[%c0_18, %c0_19] : memref<16x128xbf16, #tpu.memory_space<vmem>>, vector<16x128xbf16>
    tpu.vector_store %arg7[%c0_18, %c0_19], %42 {strides = array<i32>} : memref<16x128xbf16, #tpu.memory_space<vmem>>, vector<16x128xbf16>,
    return
  }
  func.func @transform_0(%arg0: i32, %arg1: i32) -> (i32, i32) {
    %c0_i32 = arith.constant 0 : i32
    %c0_i32_0 = arith.constant 0 : i32
    return %arg0, %c0_i32 : i32, i32
  }
  func.func @transform_1(%arg0: i32, %arg1: i32) -> (i32, i32) {
    %c0_i32 = arith.constant 0 : i32
    %c0_i32_0 = arith.constant 0 : i32
    %c0_i32_1 = arith.constant 0 : i32
    return %c0_i32, %c0_i32_0 : i32, i32
  }
  func.func @transform_2(%arg0: i32, %arg1: i32) -> (i32, i32) {
    %c0_i32 = arith.constant 0 : i32
    %c0_i32_0 = arith.constant 0 : i32
    %c0_i32_1 = arith.constant 0 : i32
    return %c0_i32, %c0_i32_0 : i32, i32
  }
  func.func @transform_3(%arg0: i32, %arg1: i32) -> (i32, i32) {
    %c0_i32 = arith.constant 0 : i32
    %c0_i32_0 = arith.constant 0 : i32
    return %c0_i32, %arg1 : i32, i32
  }
  func.func @transform_4(%arg0: i32, %arg1: i32) -> (i32, i32) {
    %c0_i32 = arith.constant 0 : i32
    %c0_i32_0 = arith.constant 0 : i32
    return %c0_i32, %arg1 : i32, i32
  }
  func.func @transform_5(%arg0: i32, %arg1: i32) -> (i32, i32) {
    %c0_i32 = arith.constant 0 : i32
    return %arg0, %arg1 : i32, i32
  }
}

module attributes {stable_mosaic.version = 11 : i64} {
  func.func @flash_attn_kernel(%arg0: i32, %arg1: i32, %arg2: i32, %arg3: i32, %arg4: memref<1x1x1x8x32xbf16, #tpu.memory_space<vmem>>, %arg5: memref<1x1x1x8x32xbf16, #tpu.memory_space<vmem>>, %arg6: memref<1x1x1x8x32xbf16, #tpu.memory_space<vmem>>, %arg7: memref<2x8x32xf32, #tpu.memory_space<vmem>>, %arg8: memref<2x8x32xf32, #tpu.memory_space<vmem>>, %arg9: memref<1x1x8x32xbf16, #tpu.memory_space<vmem>>, %arg10: memref<8x1xf32, #tpu.memory_space<vmem>>, %arg11: memref<8x1xf32, #tpu.memory_space<vmem>>, %arg12: memref<8x32xf32, #tpu.memory_space<vmem>>, %arg13: memref<8x32xbf16, #tpu.memory_space<vmem>>) attributes {dimension_semantics = [#tpu.dimension_semantics<parallel>, #tpu.dimension_semantics<parallel>, #tpu.dimension_semantics<parallel>, #tpu.dimension_semantics<arbitrary>], iteration_bounds = array<i64: 2, 4, 2, 2>, scalar_prefetch = 0 : i64, scratch_operands = 4 : i64, tpu.core_type = #tpu.core_type<tc>, window_params = [{transform_indices = @transform_0, window_bounds = array<i64: 1, 1, 1, 8, 32>}, {transform_indices = @transform_1, window_bounds = array<i64: 1, 1, 1, 8, 32>}, {transform_indices = @transform_2, window_bounds = array<i64: 1, 1, 1, 8, 32>}, {transform_indices = @transform_3, window_bounds = array<i64: 2, 8, 32>}, {transform_indices = @transform_4, window_bounds = array<i64: 2, 8, 32>}, {transform_indices = @transform_5, window_bounds = array<i64: 1, 1, 8, 32>}]} {
    %c8_i32 = arith.constant 8 : i32
    %0 = arith.muli %arg2, %c8_i32 : i32
    %c8_i32_0 = arith.constant 8 : i32
    %1 = arith.muli %arg3, %c8_i32_0 : i32
    %c0_i32 = arith.constant 0 : i32
    %2 = arith.cmpi eq, %arg3, %c0_i32 : i32
    %3 = arith.extui %2 : i1 to i32
    %c0_i32_1 = arith.constant 0 : i32
    %4 = arith.cmpi ne, %3, %c0_i32_1 : i32
    scf.if %4 {
      %cst = arith.constant -1.000000e+30 : f32
      %13 = vector.broadcast %cst : f32 to vector<8x1xf32>
      %c0 = arith.constant 0 : index
      %c0_6 = arith.constant 0 : index
      %14 = vector.load %arg10[%c0, %c0_6] : memref<8x1xf32, #tpu.memory_space<vmem>>, vector<8x1xf32>
      tpu.vector_store %arg10[%c0, %c0_6], %13 {strides = array<i32>} : memref<8x1xf32, #tpu.memory_space<vmem>>, vector<8x1xf32>,
      %cst_7 = arith.constant 0.000000e+00 : f32
      %15 = vector.broadcast %cst_7 : f32 to vector<8x1xf32>
      %c0_8 = arith.constant 0 : index
      %c0_9 = arith.constant 0 : index
      %16 = vector.load %arg11[%c0_8, %c0_9] : memref<8x1xf32, #tpu.memory_space<vmem>>, vector<8x1xf32>
      tpu.vector_store %arg11[%c0_8, %c0_9], %15 {strides = array<i32>} : memref<8x1xf32, #tpu.memory_space<vmem>>, vector<8x1xf32>,
      %cst_10 = arith.constant 0.000000e+00 : f32
      %17 = vector.broadcast %cst_10 : f32 to vector<8x32xf32>
      %c0_11 = arith.constant 0 : index
      %c0_12 = arith.constant 0 : index
      %18 = vector.load %arg12[%c0_11, %c0_12] : memref<8x32xf32, #tpu.memory_space<vmem>>, vector<8x32xf32>
      tpu.vector_store %arg12[%c0_11, %c0_12], %17 {strides = array<i32>} : memref<8x32xf32, #tpu.memory_space<vmem>>, vector<8x32xf32>,
      %c0_13 = arith.constant 0 : index
      %c0_14 = arith.constant 0 : index
      %c0_15 = arith.constant 0 : index
      %c0_16 = arith.constant 0 : index
      %c0_17 = arith.constant 0 : index
      %19 = vector.load %arg4[%c0_13, %c0_14, %c0_15, %c0_16, %c0_17] : memref<1x1x1x8x32xbf16, #tpu.memory_space<vmem>>, vector<1x1x1x8x32xbf16>
      %20 = vector.shape_cast %19 : vector<1x1x1x8x32xbf16> to vector<8x32xbf16>
      %21 = arith.extf %20 : vector<8x32xbf16> to vector<8x32xf32>
      %c0_18 = arith.constant 0 : index
      %c0_19 = arith.constant 0 : index
      %c0_20 = arith.constant 0 : index
      %22 = vector.load %arg7[%c0_18, %c0_19, %c0_20] : memref<2x8x32xf32, #tpu.memory_space<vmem>>, vector<1x8x32xf32>
      %23 = vector.shape_cast %22 : vector<1x8x32xf32> to vector<8x32xf32>
      %c1 = arith.constant 1 : index
      %c0_21 = arith.constant 0 : index
      %c0_22 = arith.constant 0 : index
      %24 = vector.load %arg7[%c1, %c0_21, %c0_22] : memref<2x8x32xf32, #tpu.memory_space<vmem>>, vector<1x8x32xf32>
      %25 = vector.shape_cast %24 : vector<1x8x32xf32> to vector<8x32xf32>
      %26 = vector.extract_strided_slice %21 {offsets = [0, 8], sizes = [8, 8], strides = [1, 1]} : vector<8x32xf32> to vector<8x8xf32>
      %27 = vector.extract_strided_slice %21 {offsets = [0, 0], sizes = [8, 8], strides = [1, 1]} : vector<8x32xf32> to vector<8x8xf32>
      %28 = vector.extract_strided_slice %21 {offsets = [0, 16], sizes = [8, 16], strides = [1, 1]} : vector<8x32xf32> to vector<8x16xf32>
      %29 = tpu.concatenate %26, %27, %28 in 1 : vector<8x8xf32>, vector<8x8xf32>, vector<8x16xf32> -> vector<8x32xf32>
      %30 = arith.mulf %21, %23 : vector<8x32xf32>
      %31 = arith.mulf %29, %25 : vector<8x32xf32>
      %32 = arith.addf %30, %31 : vector<8x32xf32>
      %cst_23 = arith.constant 0.176776692 : f32
      %33 = vector.broadcast %cst_23 : f32 to vector<8x32xf32>
      %34 = arith.mulf %32, %33 : vector<8x32xf32>
      %35 = arith.truncf %34 : vector<8x32xf32> to vector<8x32xbf16>
      %c0_24 = arith.constant 0 : index
      %c0_25 = arith.constant 0 : index
      %36 = vector.load %arg13[%c0_24, %c0_25] : memref<8x32xbf16, #tpu.memory_space<vmem>>, vector<8x32xbf16>
      tpu.vector_store %arg13[%c0_24, %c0_25], %35 {strides = array<i32>} : memref<8x32xbf16, #tpu.memory_space<vmem>>, vector<8x32xbf16>,
    } else {
    }
    %c8_i32_2 = arith.constant 8 : i32
    %5 = arith.addi %0, %c8_i32_2 : i32
    %c1_i32 = arith.constant 1 : i32
    %6 = arith.subi %5, %c1_i32 : i32
    %7 = arith.cmpi sle, %1, %6 : i32
    %8 = arith.extui %7 : i1 to i32
    %c0_i32_3 = arith.constant 0 : i32
    %9 = arith.cmpi ne, %8, %c0_i32_3 : i32
    scf.if %9 {
      %c0 = arith.constant 0 : index
      %c0_6 = arith.constant 0 : index
      %c0_7 = arith.constant 0 : index
      %c0_8 = arith.constant 0 : index
      %c0_9 = arith.constant 0 : index
      %13 = vector.load %arg5[%c0, %c0_6, %c0_7, %c0_8, %c0_9] : memref<1x1x1x8x32xbf16, #tpu.memory_space<vmem>>, vector<1x1x1x8x32xbf16>
      %14 = vector.shape_cast %13 : vector<1x1x1x8x32xbf16> to vector<8x32xbf16>
      %15 = arith.extf %14 : vector<8x32xbf16> to vector<8x32xf32>
      %c0_10 = arith.constant 0 : index
      %c0_11 = arith.constant 0 : index
      %c0_12 = arith.constant 0 : index
      %16 = vector.load %arg8[%c0_10, %c0_11, %c0_12] : memref<2x8x32xf32, #tpu.memory_space<vmem>>, vector<1x8x32xf32>
      %17 = vector.shape_cast %16 : vector<1x8x32xf32> to vector<8x32xf32>
      %c1 = arith.constant 1 : index
      %c0_13 = arith.constant 0 : index
      %c0_14 = arith.constant 0 : index
      %18 = vector.load %arg8[%c1, %c0_13, %c0_14] : memref<2x8x32xf32, #tpu.memory_space<vmem>>, vector<1x8x32xf32>
      %19 = vector.shape_cast %18 : vector<1x8x32xf32> to vector<8x32xf32>
      %20 = vector.extract_strided_slice %15 {offsets = [0, 8], sizes = [8, 8], strides = [1, 1]} : vector<8x32xf32> to vector<8x8xf32>
      %21 = vector.extract_strided_slice %15 {offsets = [0, 0], sizes = [8, 8], strides = [1, 1]} : vector<8x32xf32> to vector<8x8xf32>
      %22 = vector.extract_strided_slice %15 {offsets = [0, 16], sizes = [8, 16], strides = [1, 1]} : vector<8x32xf32> to vector<8x16xf32>
      %23 = tpu.concatenate %20, %21, %22 in 1 : vector<8x8xf32>, vector<8x8xf32>, vector<8x16xf32> -> vector<8x32xf32>
      %24 = arith.mulf %15, %17 : vector<8x32xf32>
      %25 = arith.mulf %23, %19 : vector<8x32xf32>
      %26 = arith.addf %24, %25 : vector<8x32xf32>
      %c0_15 = arith.constant 0 : index
      %c0_16 = arith.constant 0 : index
      %27 = vector.load %arg13[%c0_15, %c0_16] : memref<8x32xbf16, #tpu.memory_space<vmem>>, vector<8x32xbf16>
      %28 = arith.truncf %26 : vector<8x32xf32> to vector<8x32xbf16>
      %cst = arith.constant dense<0.000000e+00> : vector<8x8xf32>
      %29 = tpu.matmul %27, %28, %cst {dimension_numbers = #tpu.dot_dimension_numbers<[1], [1], [0], [0], [0, 0, 1, 0], [], []>} : vector<8x32xbf16>, vector<8x32xbf16>, vector<8x8xf32> -> vector<8x8xf32>
      %30 = tpu.iota {dimensions = array<i32: 0>} : vector<8x8xi32>
      %31 = vector.broadcast %0 : i32 to vector<8x8xi32>
      %32 = arith.addi %31, %30 : vector<8x8xi32>
      %33 = tpu.iota {dimensions = array<i32: 1>} : vector<8x8xi32>
      %34 = vector.broadcast %1 : i32 to vector<8x8xi32>
      %35 = arith.addi %34, %33 : vector<8x8xi32>
      %36 = arith.cmpi sle, %35, %32 : vector<8x8xi32>
      %cst_17 = arith.constant -1.000000e+30 : f32
      %37 = vector.broadcast %cst_17 : f32 to vector<8x8xf32>
      %38 = arith.select %36, %29, %37 : vector<8x8xi1>, vector<8x8xf32>
      %c0_18 = arith.constant 0 : index
      %c0_19 = arith.constant 0 : index
      %39 = vector.load %arg10[%c0_18, %c0_19] : memref<8x1xf32, #tpu.memory_space<vmem>>, vector<8x1xf32>
      %cst_20 = arith.constant dense<0xFF800000> : vector<8xf32>
      %40 = vector.multi_reduction <maximumf>, %38, %cst_20 [1] : vector<8x8xf32> to vector<8xf32>
      %41 = vector.shape_cast %40 : vector<8xf32> to vector<8x1xf32>
      %42 = arith.maximumf %39, %41 : vector<8x1xf32>
      %43 = arith.subf %39, %42 : vector<8x1xf32>
      %44 = math.exp %43 : vector<8x1xf32>
      %45 = vector.broadcast %42 : vector<8x1xf32> to vector<8x8xf32>
      %46 = arith.subf %38, %45 : vector<8x8xf32>
      %47 = math.exp %46 : vector<8x8xf32>
      %c0_21 = arith.constant 0 : index
      %c0_22 = arith.constant 0 : index
      %48 = vector.load %arg11[%c0_21, %c0_22] : memref<8x1xf32, #tpu.memory_space<vmem>>, vector<8x1xf32>
      %49 = arith.mulf %44, %48 : vector<8x1xf32>
      %cst_23 = arith.constant dense<0.000000e+00> : vector<8xf32>
      %50 = vector.multi_reduction <add>, %47, %cst_23 [1] : vector<8x8xf32> to vector<8xf32>
      %51 = vector.shape_cast %50 : vector<8xf32> to vector<8x1xf32>
      %52 = arith.addf %49, %51 : vector<8x1xf32>
      %c0_24 = arith.constant 0 : index
      %c0_25 = arith.constant 0 : index
      %53 = vector.load %arg11[%c0_24, %c0_25] : memref<8x1xf32, #tpu.memory_space<vmem>>, vector<8x1xf32>
      tpu.vector_store %arg11[%c0_24, %c0_25], %52 {strides = array<i32>} : memref<8x1xf32, #tpu.memory_space<vmem>>, vector<8x1xf32>,
      %c0_26 = arith.constant 0 : index
      %c0_27 = arith.constant 0 : index
      %54 = vector.load %arg12[%c0_26, %c0_27] : memref<8x32xf32, #tpu.memory_space<vmem>>, vector<8x32xf32>
      %55 = vector.broadcast %44 : vector<8x1xf32> to vector<8x32xf32>
      %56 = arith.mulf %55, %54 : vector<8x32xf32>
      %57 = arith.truncf %47 : vector<8x8xf32> to vector<8x8xbf16>
      %c0_28 = arith.constant 0 : index
      %c0_29 = arith.constant 0 : index
      %c0_30 = arith.constant 0 : index
      %c0_31 = arith.constant 0 : index
      %c0_32 = arith.constant 0 : index
      %58 = vector.load %arg6[%c0_28, %c0_29, %c0_30, %c0_31, %c0_32] : memref<1x1x1x8x32xbf16, #tpu.memory_space<vmem>>, vector<1x1x1x8x32xbf16>
      %59 = vector.shape_cast %58 : vector<1x1x1x8x32xbf16> to vector<8x32xbf16>
      %cst_33 = arith.constant dense<0.000000e+00> : vector<8x32xf32>
      %60 = tpu.matmul %57, %59, %cst_33 {dimension_numbers = #tpu.dot_dimension_numbers<[1], [0], [0], [1], [0, 0, 1, 1], [], []>} : vector<8x8xbf16>, vector<8x32xbf16>, vector<8x32xf32> -> vector<8x32xf32>
      %61 = arith.addf %56, %60 : vector<8x32xf32>
      %c0_34 = arith.constant 0 : index
      %c0_35 = arith.constant 0 : index
      %62 = vector.load %arg12[%c0_34, %c0_35] : memref<8x32xf32, #tpu.memory_space<vmem>>, vector<8x32xf32>
      tpu.vector_store %arg12[%c0_34, %c0_35], %61 {strides = array<i32>} : memref<8x32xf32, #tpu.memory_space<vmem>>, vector<8x32xf32>,
      %c0_36 = arith.constant 0 : index
      %c0_37 = arith.constant 0 : index
      %63 = vector.load %arg10[%c0_36, %c0_37] : memref<8x1xf32, #tpu.memory_space<vmem>>, vector<8x1xf32>
      tpu.vector_store %arg10[%c0_36, %c0_37], %42 {strides = array<i32>} : memref<8x1xf32, #tpu.memory_space<vmem>>, vector<8x1xf32>,
    } else {
    }
    %c1_i32_4 = arith.constant 1 : i32
    %10 = arith.cmpi eq, %arg3, %c1_i32_4 : i32
    %11 = arith.extui %10 : i1 to i32
    %c0_i32_5 = arith.constant 0 : i32
    %12 = arith.cmpi ne, %11, %c0_i32_5 : i32
    scf.if %12 {
      %c0 = arith.constant 0 : index
      %c0_6 = arith.constant 0 : index
      %13 = vector.load %arg12[%c0, %c0_6] : memref<8x32xf32, #tpu.memory_space<vmem>>, vector<8x32xf32>
      %c0_7 = arith.constant 0 : index
      %c0_8 = arith.constant 0 : index
      %14 = vector.load %arg11[%c0_7, %c0_8] : memref<8x1xf32, #tpu.memory_space<vmem>>, vector<8x1xf32>
      %15 = tpu.reciprocal %14 {approx = true} : vector<8x1xf32> -> vector<8x1xf32>
      %16 = vector.broadcast %15 : vector<8x1xf32> to vector<8x32xf32>
      %17 = arith.mulf %13, %16 : vector<8x32xf32>
      %18 = arith.truncf %17 : vector<8x32xf32> to vector<8x32xbf16>
      %c0_9 = arith.constant 0 : index
      %c0_10 = arith.constant 0 : index
      %c0_11 = arith.constant 0 : index
      %c0_12 = arith.constant 0 : index
      %19 = vector.load %arg9[%c0_9, %c0_10, %c0_11, %c0_12] : memref<1x1x8x32xbf16, #tpu.memory_space<vmem>>, vector<1x1x8x32xbf16>
      %20 = vector.shape_cast %19 : vector<1x1x8x32xbf16> to vector<8x32xbf16>
      %21 = vector.shape_cast %18 : vector<8x32xbf16> to vector<1x1x8x32xbf16>
      tpu.vector_store %arg9[%c0_9, %c0_10, %c0_11, %c0_12], %21 {strides = array<i32>} : memref<1x1x8x32xbf16, #tpu.memory_space<vmem>>, vector<1x1x8x32xbf16>,
    } else {
    }
    return
  }
  func.func @transform_0(%arg0: i32, %arg1: i32, %arg2: i32, %arg3: i32) -> (i32, i32, i32, i32, i32) {
    %c0_i32 = arith.constant 0 : i32
    %c0_i32_0 = arith.constant 0 : i32
    %c0_i32_1 = arith.constant 0 : i32
    return %c0_i32, %arg0, %arg1, %arg2, %c0_i32_0 : i32, i32, i32, i32, i32
  }
  func.func @transform_1(%arg0: i32, %arg1: i32, %arg2: i32, %arg3: i32) -> (i32, i32, i32, i32, i32) {
    %c1_i32 = arith.constant 1 : i32
    %c0_i32 = arith.constant 0 : i32
    %c0_i32_0 = arith.constant 0 : i32
    return %c1_i32, %arg0, %arg1, %arg3, %c0_i32 : i32, i32, i32, i32, i32
  }
  func.func @transform_2(%arg0: i32, %arg1: i32, %arg2: i32, %arg3: i32) -> (i32, i32, i32, i32, i32) {
    %c2_i32 = arith.constant 2 : i32
    %c0_i32 = arith.constant 0 : i32
    %c0_i32_0 = arith.constant 0 : i32
    return %c2_i32, %arg0, %arg1, %arg3, %c0_i32 : i32, i32, i32, i32, i32
  }
  func.func @transform_3(%arg0: i32, %arg1: i32, %arg2: i32, %arg3: i32) -> (i32, i32, i32) {
    %c0_i32 = arith.constant 0 : i32
    %c0_i32_0 = arith.constant 0 : i32
    %c0_i32_1 = arith.constant 0 : i32
    return %c0_i32, %arg2, %c0_i32_0 : i32, i32, i32
  }
  func.func @transform_4(%arg0: i32, %arg1: i32, %arg2: i32, %arg3: i32) -> (i32, i32, i32) {
    %c0_i32 = arith.constant 0 : i32
    %c0_i32_0 = arith.constant 0 : i32
    %c0_i32_1 = arith.constant 0 : i32
    return %c0_i32, %arg3, %c0_i32_0 : i32, i32, i32
  }
  func.func @transform_5(%arg0: i32, %arg1: i32, %arg2: i32, %arg3: i32) -> (i32, i32, i32, i32) {
    %c0_i32 = arith.constant 0 : i32
    %c0_i32_0 = arith.constant 0 : i32
    return %arg0, %arg1, %arg2, %c0_i32 : i32, i32, i32, i32
  }
}

module attributes {stable_mosaic.version = 11 : i64} {
  func.func @matmul_acc_kernel(%arg0: i32, %arg1: i32, %arg2: i32, %arg3: memref<16x256xbf16, #tpu.memory_space<vmem>>, %arg4: memref<256x128xbf16, #tpu.memory_space<vmem>>, %arg5: memref<1x128xf32, #tpu.memory_space<vmem>>, %arg6: memref<16x128xf32, #tpu.memory_space<vmem>>, %arg7: memref<16x128xf32, #tpu.memory_space<vmem>>, %arg8: memref<16x128xf32, #tpu.memory_space<vmem>>) attributes {dimension_semantics = [#tpu.dimension_semantics<parallel>, #tpu.dimension_semantics<parallel>, #tpu.dimension_semantics<arbitrary>], iteration_bounds = array<i64: 2, 1, 2>, scalar_prefetch = 0 : i64, scratch_operands = 1 : i64, tpu.core_type = #tpu.core_type<tc>, window_params = [{transform_indices = @transform_0, window_bounds = array<i64: 16, 256>}, {transform_indices = @transform_1, window_bounds = array<i64: 256, 128>}, {transform_indices = @transform_2, window_bounds = array<i64: 1, 128>}, {transform_indices = @transform_3, window_bounds = array<i64: 16, 128>}, {transform_indices = @transform_4, window_bounds = array<i64: 16, 128>}]} {
    %c0_i32 = arith.constant 0 : i32
    %0 = arith.cmpi eq, %arg2, %c0_i32 : i32
    %1 = arith.extui %0 : i1 to i32
    %c0_i32_0 = arith.constant 0 : i32
    %2 = arith.cmpi ne, %1, %c0_i32_0 : i32
    scf.if %2 {
      %cst_9 = arith.constant 0.000000e+00 : f32
      %12 = vector.broadcast %cst_9 : f32 to vector<16x128xf32>
      %c0_10 = arith.constant 0 : index
      %c0_11 = arith.constant 0 : index
      %13 = vector.load %arg8[%c0_10, %c0_11] : memref<16x128xf32, #tpu.memory_space<vmem>>, vector<16x128xf32>
      tpu.vector_store %arg8[%c0_10, %c0_11], %12 {strides = array<i32>} : memref<16x128xf32, #tpu.memory_space<vmem>>, vector<16x128xf32>,
    } else {
    }
    %c0 = arith.constant 0 : index
    %c0_1 = arith.constant 0 : index
    %3 = vector.load %arg8[%c0, %c0_1] : memref<16x128xf32, #tpu.memory_space<vmem>>, vector<16x128xf32>
    %c0_2 = arith.constant 0 : index
    %c0_3 = arith.constant 0 : index
    %4 = vector.load %arg3[%c0_2, %c0_3] : memref<16x256xbf16, #tpu.memory_space<vmem>>, vector<16x256xbf16>
    %c0_4 = arith.constant 0 : index
    %c0_5 = arith.constant 0 : index
    %5 = vector.load %arg4[%c0_4, %c0_5] : memref<256x128xbf16, #tpu.memory_space<vmem>>, vector<256x128xbf16>
    %cst = arith.constant dense<0.000000e+00> : vector<16x128xf32>
    %6 = tpu.matmul %4, %5, %cst {dimension_numbers = #tpu.dot_dimension_numbers<[1], [0], [0], [1], [0, 0, 1, 1], [], []>} : vector<16x256xbf16>, vector<256x128xbf16>, vector<16x128xf32> -> vector<16x128xf32>
    %7 = arith.addf %3, %6 : vector<16x128xf32>
    %c0_6 = arith.constant 0 : index
    %c0_7 = arith.constant 0 : index
    %8 = vector.load %arg8[%c0_6, %c0_7] : memref<16x128xf32, #tpu.memory_space<vmem>>, vector<16x128xf32>
    tpu.vector_store %arg8[%c0_6, %c0_7], %7 {strides = array<i32>} : memref<16x128xf32, #tpu.memory_space<vmem>>, vector<16x128xf32>,
    %c1_i32 = arith.constant 1 : i32
    %9 = arith.cmpi eq, %arg2, %c1_i32 : i32
    %10 = arith.extui %9 : i1 to i32
    %c0_i32_8 = arith.constant 0 : i32
    %11 = arith.cmpi ne, %10, %c0_i32_8 : i32
    scf.if %11 {
      %c0_9 = arith.constant 0 : index
      %c0_10 = arith.constant 0 : index
      %12 = vector.load %arg8[%c0_9, %c0_10] : memref<16x128xf32, #tpu.memory_space<vmem>>, vector<16x128xf32>
      %c0_11 = arith.constant 0 : index
      %c0_12 = arith.constant 0 : index
      %13 = vector.load %arg5[%c0_11, %c0_12] : memref<1x128xf32, #tpu.memory_space<vmem>>, vector<1x128xf32>
      %14 = vector.broadcast %13 : vector<1x128xf32> to vector<16x128xf32>
      %15 = arith.addf %12, %14 : vector<16x128xf32>
      %c0_13 = arith.constant 0 : index
      %c0_14 = arith.constant 0 : index
      %16 = vector.load %arg6[%c0_13, %c0_14] : memref<16x128xf32, #tpu.memory_space<vmem>>, vector<16x128xf32>
      %17 = arith.addf %15, %16 : vector<16x128xf32>
      %c0_15 = arith.constant 0 : index
      %c0_16 = arith.constant 0 : index
      %18 = vector.load %arg7[%c0_15, %c0_16] : memref<16x128xf32, #tpu.memory_space<vmem>>, vector<16x128xf32>
      tpu.vector_store %arg7[%c0_15, %c0_16], %17 {strides = array<i32>} : memref<16x128xf32, #tpu.memory_space<vmem>>, vector<16x128xf32>,
    } else {
    }
    return
  }
  func.func @transform_0(%arg0: i32, %arg1: i32, %arg2: i32) -> (i32, i32) {
    %c0_i32 = arith.constant 0 : i32
    return %arg0, %arg2 : i32, i32
  }
  func.func @transform_1(%arg0: i32, %arg1: i32, %arg2: i32) -> (i32, i32) {
    %c0_i32 = arith.constant 0 : i32
    return %arg2, %arg1 : i32, i32
  }
  func.func @transform_2(%arg0: i32, %arg1: i32, %arg2: i32) -> (i32, i32) {
    %c0_i32 = arith.constant 0 : i32
    %c0_i32_0 = arith.constant 0 : i32
    return %c0_i32, %arg1 : i32, i32
  }
  func.func @transform_3(%arg0: i32, %arg1: i32, %arg2: i32) -> (i32, i32) {
    %c0_i32 = arith.constant 0 : i32
    return %arg0, %arg1 : i32, i32
  }
  func.func @transform_4(%arg0: i32, %arg1: i32, %arg2: i32) -> (i32, i32) {
    %c0_i32 = arith.constant 0 : i32
    return %arg0, %arg1 : i32, i32
  }
}

</mosaic_0001>

<bundles_post_ra>
// kernel: phi2_block_forward.5
= control target key start
LH: loop header
LB: loop body
LE: loop exit
PB: predicated region body
PF: predicated region fallthrough
CT: control target
= control target key end

     0   :  { %10 = vsyncpa [#allocation3], 0  ;;  %s1128_s0 = inlined_call_operand.vmem [shape: f32[32,128], index: 0, kind: input, shape index: {}]   ;;  %s1129_s1 = inlined_call_operand.vmem [shape: f32[1,128], index: 1, kind: input, shape index: {}]   ;;  %s1130_s2 = inlined_call_operand.vmem [shape: f32[1,128], index: 2, kind: input, shape index: {}]   ;;  %s1131_s3 = inlined_call_operand.hbm [shape: bf16[128,384], index: 3, kind: input, shape index: {}]   ;;  %s1132_s4 = inlined_call_operand.vmem [shape: f32[1,384], index: 4, kind: input, shape index: {}]   ;;  %s1133_s5 = inlined_call_operand.vmem [shape: bf16[32,384], index: 5, kind: output, shape index: {}]  }
   0x1   :  { %12 = vsyncpa [#allocation3 + $0x1], 0  ;;  %s928_s18 = smov 0   ;;  %s930_s19 = smov 0  }
   0x2   :  { %s932_s20 = smov 0   ;;  %s934_s21 = smov 0  }
   0x3   :  { %s936_s22 = smov 0   ;;  %s938_s23 = smov 0  }
   0x4   :  { %s940_s24 = smov 0   ;;  %s942_s25 = smov 0  }
   0x5   :  { %s944_s26 = smov 0   ;;  %s946_s27 = smov 0  }
   0x6 LB: > { %s607_s28 = sadd.s32 4294967295, %s890_s27   ;;  %s27_s29 = sadd.s32 1, %s882_s25  ;;  %s890_s27 = sphi %s946_s27, %s18_s27   ;;  %s886_s26 = sphi %s944_s26, %s1150_s26   ;;  %s882_s25 = sphi %s942_s25, %s1149_s25   ;;  %s878_s24 = sphi %s940_s24, %s1148_s24   ;;  %s874_s23 = sphi %s938_s23, %s1147_s23   ;;  %s870_s22 = sphi %s936_s22, %s1146_s22   ;;  %s866_s21 = sphi %s934_s21, %s1145_s21   ;;  %s862_s20 = sphi %s932_s20, %s1144_s20   ;;  %s858_s19 = sphi %s930_s19, %s1143_s19   ;;  %s854_s18 = sphi %s928_s18, %s1142_s18  }
   0x7   : > { %p28_p0 = scmp.ge.s32.totalorder %s27_s29, 3  ;;  %s30_s30 = sadd.s32 1, %s886_s26 }
   0x8   : > { %s105_s6 = sadd.s32 1, %s870_s22  ;;  %p112_p1 = scmp.ne.s32.totalorder %s870_s22, %s866_s21 }
   0x9   : > { %s1152_s29 = smov (%p28_p0, %s27_s29), 0  ;;  %s1154_s30 = smov (!%p28_p0, %s30_s30), %s886_s26 }
   0xa   : > { %s102_s7 = ssub.s32 %s882_s25, %s1152_s29  ;;  %p113_p2 = scmp.eq.s32.totalorder %s890_s27, 0 }
   0xb   : > { %p32_p3 = scmp.ge.s32.totalorder %s1154_s30, 2  ;;  %p103_p4 = scmp.eq.s32.totalorder %s102_s7, 0 }
   0xc   : > { %p988_p5 = por %p113_p2, %p112_p1  ;;  %p118_p6 = scmp.ne.s32.totalorder %s866_s21, %s862_s20 }
   0xd   : > { %s1156_s30 = smov (%p32_p3, %s1154_s30), 0  ;;  %p119_p7 = scmp.eq.s32.totalorder %s607_s28, 0 }
   0xe   : > { %1136 = sst [smem:[#allocation6_spill]] %s1156_s30  ;;  %s154_s10 = ssub.s32 %s886_s26, %s1156_s30 }
   0xf   : > { %s996_s9 = scalar_select %p103_p4, %s870_s22, %s105_s6  }
  0x10   : > { %s156_s11 = sor.u32 %s154_s10, %s102_s7  ;;  %s159_s12 = sadd.s32 1, %s858_s19 }
  0x11   : > { %p1001_p8 = por %p119_p7, %p118_p6  ;;  %p157_p9 = scmp.eq.s32.totalorder %s156_s11, 0 }
  0x12   : > { %p169_p10 = scmp.ne.s32.totalorder %s858_s19, %s854_s18  ;;  %p170_p11 = scmp.eq.s32.totalorder %s607_s28, 5 }
  0x13   : > { %s1008_s14 = scalar_select %p157_p9, %s858_s19, %s159_s12  }
  0x14   : > { %p1010_p12 = por %p170_p11, %p169_p10  ;;  %p680_p13 = scmp.lt.s32.totalorder %s890_s27, 6 }
  0x15   : > { %s211_s16 = sand.u32 1, %s870_s22   ;;  %s612_s20 = sshll.u32 %s882_s25, 6 }
  0x16   : > { %s1138_s15 = scalar_select %p1010_p12, 1, 0 }
  0x17   : > { %s611_s17 = sshll.u32 %s211_s16, 6  ;;  %s1020_s10 = scalar_lea.hbm %s1131_s3, %s612_s20 }
  0x18   : > { %s215_s28 = scalar_lea.vmem [#allocation2], %s611_s17  ;;  %p1026_p0 = pnand %p680_p13, %p988_p5 }
  0x19   : > { %s221_s11 = sshll.u32 %s215_s28, 4  ;;  %s1030_s30 = scalar_lea.sflag [#allocation3], %s211_s16  ;;  %s1022_s11 = int_to_ptr.vmem [resolvable:$true] %s221_s11 }
  0x1a   : > { %s778_s6 = scalar_lea.hbm %s1020_s10, 1024  ;;  %p780_p2 = pneg %p1026_p0 }
  0x1b   : > { %p779_p1 = scmp.ne.s32.totalorder %s1020_s10, %s778_s6  ;;  %s783_s8 = scalar_lea.hbm %s1131_s3, 3072 }
  0x1c   : > { %p784_p5 = scmp.lt.u32.totalorder %s1020_s10, %s1131_s3  ;;  %p785_p6 = scmp.lt.u32.totalorder %s783_s8, %s778_s6 }
  0x1d   : > { %p781_p3 = pnand %p780_p2, %p779_p1  ;;  %p787_p9 = scmp.lt.u32.totalorder %s778_s6, %s1020_s10 }
  0x1e   : > { %p786_p7 = por %p785_p6, %p784_p5 }
  0x1f   : > { %p782_p4 = pneg %p781_p3 }
  0x20   : > { %p788_p10 = por %p787_p9, %p786_p7 }
  0x22   : > { %p789_p11 = pnand %p788_p10, %p782_p4 }
  0x24   : > { %792 = shalt.err (!%p789_p11)
}
  0x25   : > { %s793_s16 = scalar_lea.vmem %s1022_s11, 1024  ;;  %s892_s17 = smov [#allocation2]  }
  0x26   : > { %p794_p13 = scmp.ne.s32.totalorder %s1022_s11, %s793_s16  ;;  %s798_s20 = sshll.u32 %s892_s17, 4  ;;  %s799_s20 = int_to_ptr.vmem [resolvable:$false] %s798_s20 }
  0x27   : > { %s800_s7 = scalar_lea.vmem %s799_s20, 2048  ;;  %p801_p12 = scmp.lt.s32.totalorder %s1022_s11, %s799_s20 }
  0x28   : > { %p796_p1 = pnand %p794_p13, %p780_p2  ;;  %p802_p5 = scmp.lt.s32.totalorder %s800_s7, %s793_s16 }
  0x2a   : > { %p797_p3 = pneg %p796_p1  ;;  %p803_p6 = por %p802_p5, %p801_p12 }
  0x2c   : > { %p804_p7 = pnand %p803_p6, %p797_p3 }
  0x2e   : > { %807 = shalt.err (!%p804_p7)
}
  0x2f   : > { %s893_s6 = smov 192   ;;  %s894_s8 = smov 64  }
  0x30   : > { %s895_s28 = smov 4   ;;  %p613_p2 = scmp.ge.s32.totalorder %s890_s27, 1 }
  0x31   : > { %679 = dma.hbm_to_vmem [thread:$0]  (!%p1026_p0), %s1020_s10, 1024, %s1022_s11, %s1030_s30, %s893_s6, %s894_s8, %s895_s28  }
  0x32   : > { %p235_p4 = scmp.lt.s32.totalorder %s890_s27, 7 }
  0x34   : > { %p236_p9 = pnand %p613_p2, %p235_p4 }
  0x35   : > { %s241_s16 = sand.u32 (!%p236_p9), 1, %s866_s21  }
  0x36   : > { %239 = sbr.rel (%p236_p9) target bundleno = 613 (0x265), region = 40  ;;  %s614_s17 = sshll.u32 (!%p236_p9), %s241_s16, 6 }
  0x37   : > { %s242_s20 = scalar_lea.sflag (!%p236_p9), [#allocation3], %s241_s16  ;;  %s1061_s7 = scalar_lea.vmem (!%p236_p9), [#allocation2], %s614_s17 }
  0x3d   : > { %849 = dma.done.wait (%p1001_p8), %s242_s20, 1024  }
  0x3e   : > { %851 = vsyncadd (%p1001_p8), %s242_s20, 4294966272  ;;  %s616_s12 = sshll.u32 %s878_s24, 1  ;;  %v766_v2 = vld [vmem:[%s1061_s7] sm:$0xff]   ;;  %v896_v3 = vmov 0.0   ;;  %v767_v12 = vld [vmem:[%s1061_s7 + $0x8] sm:$0xff]   ;;  %vm897_vm0 = vmmov 0  }
  0x3f   : > { %p280_p12 = scmp.lt.s32.totalorder %s616_s12, 3  ;;  %653 = vmatprep.subr.bf16.mxu0 %v896_v3  ;;  %v768_v13 = vld [vmem:[%s1061_s7 + $0x10] sm:$0xff]   ;;  %v769_v14 = vld [vmem:[%s1061_s7 + $0x18] sm:$0xff]   ;;  %v770_v15 = vld [vmem:[%s1061_s7 + $0x20] sm:$0xff]   ;;  %669 = vmatprep.mubr.msk.bf16.mxu0 %vm897_vm0, %v896_v3  ;;  %p285_p8 = scmp.lt.s32.totalorder %s874_s23, 2 }
  0x40   : > { %654 = vmatpush3.bf16.msra.mxu0 %v766_v2  ;;  %v771_v16 = vld [vmem:[%s1061_s7 + $0x28] sm:$0xff]   ;;  %v772_v17 = vld [vmem:[%s1061_s7 + $0x30] sm:$0xff]   ;;  %v773_v18 = vld [vmem:[%s1061_s7 + $0x38] sm:$0xff]   ;;  %p1140_p0 = scmp.ne.s32.totalorder %s1138_s15, 0 }
  0x41   : > { %s1158_s12 = smov (!%p280_p12, %s616_s12), 3  ;;  %655 = vmatprep.subr.bf16.mxu0 %v896_v3  ;;  %v618_v27 = vld [vmem:[%s1129_s1] ss:$0 sm:$0xff] }
  0x42   : > { %s617_s30 = sshll.u32 %s1158_s12, 3  ;;  %v619_v31 = vld [vmem:[%s1130_s2] ss:$0 sm:$0xff] }
  0x43   : > { %s283_s6 = scalar_lea.vmem %s1128_s0, %s617_s30  ;;  %s276_s30 = sand.u32 1, %s854_s18  }
  0x44   : > { %v290_v0 = vld [vmem:[%s283_s6] sm:$0xff]  ;;  %v291_v1 = vld [vmem:[%s283_s6 + $0x8] sm:$0xff]  ;;  %656 = vmatpush3.bf16.msra.mxu0 %v767_v12  ;;  %s286_s17 = scalar_select %p285_p8, %s874_s23, 2 }
  0x45   : > { %292 = vadd.xlane.f32.xlu0 %v290_v0  ;;  %657 = vmatprep.subr.bf16.mxu0 %v896_v3  ;;  %s615_s10 = sshll.u32 %s276_s30, 3  ;;  %s673_s6 = smul.u32 (%p1140_p0), 6, %s878_s24 }
  0x46   : > { %s287_s12 = scalar_lea.vmem %s1132_s4, %s286_s17  ;;  %s278_s11 = scalar_lea.vmem [#allocation4], %s615_s10 }
  0x47   : > { %v620_v36 = vld [vmem:[%s287_s12] ss:$0 sm:$0xff]  ;;  %s465_s13 = sadd.s32 (%p1140_p0), %s874_s23, %s673_s6 }
  0x48   : > { %658 = vmatpush3.bf16.msra.mxu0 %v768_v13  ;;  %s634_s18 = sshll.u32 (%p1140_p0), %s465_s13, 2 }
  0x49   : > { %294 = vadd.xlane.f32.xlu0 %v291_v1  ;;  %659 = vmatprep.subr.bf16.mxu0 %v896_v3  ;;  %s467_s16 = scalar_lea.vmem (%p1140_p0), %s1133_s5, %s634_s18 }
  0x4c   : > { %660 = vmatpush3.bf16.msra.mxu0 %v769_v14 }
  0x4d   : > { %661 = vmatprep.subr.bf16.mxu0 %v896_v3 }
  0x50   : > { %662 = vmatpush3.bf16.msra.mxu0 %v770_v15 }
  0x51   : > { %663 = vmatprep.subr.bf16.mxu0 %v896_v3 }
  0x54   : > { %664 = vmatpush3.bf16.msra.mxu0 %v771_v16 }
  0x55   : > { %665 = vmatprep.subr.bf16.mxu0 %v896_v3 }
  0x58   : > { %666 = vmatpush3.bf16.msra.mxu0 %v772_v17 }
  0x59   : > { %667 = vmatprep.subr.bf16.mxu0 %v896_v3 }
  0x5c   : > { %668 = vmatpush3.bf16.msra.mxu0 %v773_v18 }
  0xd2   : > { %v293_v4 = vpop.xlane.xlu0 %292 }
  0xd3   : > { %v297_v5 = vmul.f32 0.0078125, %v293_v4 }
  0xd5   : > { %v299_v6 = vsub.f32 %v290_v0, %v297_v5 }
  0xd6   : > { %v295_v7 = vpop.xlane.xlu0 %294 }
  0xd7   : > { %v298_v8 = vmul.f32 0.0078125, %v295_v7  ;;  %v301_v9 = vmul.f32 %v299_v6, %v299_v6 }
  0xd9   : > { %v300_v10 = vsub.f32 %v291_v1, %v298_v8  ;;  %303 = vadd.xlane.f32.xlu1 %v301_v9 }
  0xdb   : > { %v302_v11 = vmul.f32 %v300_v10, %v300_v10 }
  0xdd   : > { %305 = vadd.xlane.f32.xlu1 %v302_v11 }
 0x166   : > { %v304_v19 = vpop.xlane.xlu1 %303 }
 0x167   : > { %v307_v20 = vmul.f32 0.0078125, %v304_v19 }
 0x169   : > { %v309_v21 = vadd.f32 1e-05, %v307_v20 }
 0x16a   : > { %v306_v22 = vpop.xlane.xlu1 %305 }
 0x16b   : > { %774 = vrsqrt.f32 %v309_v21  ;;  %v308_v23 = vmul.f32 0.0078125, %v306_v22 }
 0x16d   : > { %v310_v24 = vadd.f32 1e-05, %v308_v23 }
 0x16f   : > { %776 = vrsqrt.f32 %v310_v24 }
 0x175   : > { %v775_v25 = vpop.eup %774 }
 0x176   : > { %v313_v26 = vmul.f32 %v775_v25, %v299_v6 }
 0x178   : > { %v322_v30 = vmul.f32 %v618_v27, %v313_v26 }
 0x179   : > { %v777_v28 = vpop.eup %776 }
 0x17a   : > { %v314_v29 = vmul.f32 %v777_v28, %v300_v10  ;;  %v331_v33 = vadd.f32 %v619_v31, %v322_v30 }
 0x17c   : > { %v323_v32 = vmul.f32 %v618_v27, %v314_v29 }
 0x17e   : > { %v332_v34 = vadd.f32 %v619_v31, %v323_v32 }
 0x180   : > { %v333_v35 = vpack.c.bf16 %v332_v34, %v331_v33 }
 0x182   : > { %670 = vmatmul.mubr.bf16.vlgmr.msra.gmra.mrb[0].mxu0 %v333_v35 }
 0x255   : > { %v439_v37 = vpop.f32.mrb[0].mxu0 }
 0x256   : > { %v671_v38 = vpop.f32.mrb[1].mxu0  ;;  %v440_v40 = vadd.f32 %v620_v36, %v439_v37  ;;  %462 = sbr.rel (!%p1140_p0) target bundleno = 613 (0x265), region = 48 }
 0x257   : > { %v442_v39 = vpop.f32.mrb[2].mxu0 }
 0x258   : > { %v443_v41 = vadd.f32 %v620_v36, %v442_v39  ;;  %v672_v42 = vpop.f32.mrb[3].mxu0 }
 0x25a   : > { %v642_v43 = vpack.c.bf16 %v443_v41, %v440_v40 }
 0x25c   : > { %643 = vst [vmem:[%s278_s11] sm:$0xff] %v642_v43  }
 0x263   : > { %v483_v44 = vld [vmem:[%s278_s11] sm:$0xf]  ;;  %v485_v45 = vld [vmem:[%s278_s11 + $0x4] sm:$0xf] }
 0x264   : > { %484 = vst [vmem:[%s467_s16] sm:$0xf] %v483_v44  ;;  %486 = vst [vmem:[%s467_s16 + $0xc] sm:$0xf] %v485_v45 }
 0x265 PF: > { %s18_s27 = sadd.s32 1, %s890_s27   ;;  %s1141_s15 = sld [smem:[#allocation6_spill]] }
 0x266   : > { %p15_p10 = scmp.ge.s32.totalorder %s18_s27, 8   ;;  %s1142_s18 = smov %s858_s19 }
 0x267   : > { %s1143_s19 = smov %s1008_s14  ;;  %s1144_s20 = smov %s866_s21 }
 0x268   : > { %s1145_s21 = smov %s870_s22  ;;  %s1146_s22 = smov %s996_s9 }
 0x269   : > { %s1147_s23 = smov %s882_s25  ;;  %s1148_s24 = smov %s886_s26 }
 0x26a   : > { %s1149_s25 = smov %s1152_s29  ;;  %17 = sbr.rel (!%p15_p10) target bundleno = 6 (0x6), region = 127 }
 0x26b   : > { %s1150_s26 = smov %s1141_s15 }
 0x271   :  { %523 = vsyncpa [#allocation3], 1 }
 0x272   :  { %525 = vsyncpa [#allocation3 + $0x1], 1 }

// kernel: phi2_block_forward.7
= control target key start
LH: loop header
LB: loop body
LE: loop exit
PB: predicated region body
PF: predicated region fallthrough
CT: control target
= control target key end

     0   :  { %s705_s15 = smov 0   ;;  %s707_s16 = smov 0   ;;  %s779_s0 = inlined_call_operand.vmem [shape: bf16[2,4,16,32], index: 0, kind: input, shape index: {}]   ;;  %s780_s1 = inlined_call_operand.vmem [shape: bf16[4,32,128], index: 1, kind: input, shape index: {}]   ;;  %s781_s2 = inlined_call_operand.vmem [shape: f32[1,128], index: 2, kind: input, shape index: {}]   ;;  %s782_s3 = inlined_call_operand.vmem [shape: f32[32,128], index: 3, kind: input, shape index: {}]   ;;  %s783_s4 = inlined_call_operand.vmem [shape: f32[32,128], index: 4, kind: output, shape index: {}]  }
   0x1   :  { %s709_s17 = smov 0   ;;  %s711_s18 = smov 0  }
   0x2   :  { %s713_s19 = smov 0  }
   0x3 LB: > { %s26_s20 = sadd.s32 1, %s667_s17  ;;  %s33_s21 = sadd.s32 1, %s671_s18  ;;  %s675_s19 = sphi %s713_s19, %s14_s19   ;;  %s671_s18 = sphi %s711_s18, %s787_s18   ;;  %s667_s17 = sphi %s709_s17, %s786_s17   ;;  %s663_s16 = sphi %s707_s16, %s785_s16   ;;  %s659_s15 = sphi %s705_s15, %s784_s15  }
   0x4   : > { %p27_p0 = scmp.ge.s32.totalorder %s26_s20, 4  ;;  %p560_p1 = scmp.ge.s32.totalorder %s675_s19, 1 }
   0x5   : > { %p228_p2 = scmp.lt.s32.totalorder %s675_s19, 9 }
   0x6   : > { %s789_s20 = smov (%p27_p0, %s26_s20), 0  ;;  %s791_s21 = smov (!%p27_p0, %s33_s21), %s671_s18 }
   0x7   : > { %p229_p3 = pnand %p560_p1, %p228_p2  ;;  %p35_p4 = scmp.ge.s32.totalorder %s791_s21, 2 }
   0x8   : > { %p280_p5 = scmp.lt.s32.totalorder (!%p229_p3), %s663_s16, 1  ;;  %p282_p6 = scmp.lt.s32.totalorder (!%p229_p3), %s659_s15, 3 }
   0x9   : > { %s793_s21 = smov (%p35_p4, %s791_s21), 0  ;;  %232 = sbr.rel (%p229_p3) target bundleno = 268 (0x10c), region = 36 }
   0xa   : > { %s566_s22 = sshll.u32 (!%p229_p3), %s663_s16, 1  ;;  %p570_p8 = scmp.ne.s32.totalorder (!%p229_p3), %s659_s15, 0 }
   0xb   : > { %p301_p7 = scmp.lt.s32.totalorder (!%p229_p3), %s566_s22, 3 }
  0x10   : > { %s795_s16 = smov (!%p280_p5, %s663_s16), 1  ;;  %s797_s22 = smov (!%p301_p7, %s566_s22), 3 }
  0x11   : > { %s283_s23 = scalar_select %p282_p6, %s659_s15, 3 }
  0x12   : > { %s562_s24 = sshll.u32 %s795_s16, 3  ;;  %s567_s9 = sshll.u32 %s797_s22, 3  ;;  %v677_v0 = vmov (!%p570_p8), 0.0  }
  0x13   : > { %s561_s25 = sshll.u32 %s283_s23, 1  ;;  %s579_s26 = sshll.u32 %s283_s23, 4  ;;  %323 = vst [vmem:[#allocation2] sm:$0xff] (!%p570_p8), %v677_v0  ;;  %324 = vst [vmem:[#allocation2 + $0x8] sm:$0xff] (!%p570_p8), %v677_v0 }
  0x14   : > { %s286_s27 = sadd.s32 %s562_s24, %s561_s25  ;;  %s296_s30 = scalar_lea.vmem %s780_s1, %s579_s26 }
  0x15   : > { %s563_s5 = sshll.u32 %s286_s27, 2  ;;  %s748_s12 = scalar_lea.vmem %s782_s3, %s567_s9 }
  0x16   : > { %s288_s8 = scalar_lea.vmem %s779_s0, %s563_s5  ;;  %s753_s16 = scalar_lea.vmem %s783_s4, %s567_s9 }
  0x17   : > { %322 = sbr.rel (%p570_p8) target bundleno = 30 (0x1e), region = 40 }
  0x1e PF: > { %v634_v1 = vld [vmem:[%s296_s30] sm:$0xff]   ;;  %v678_v2 = vmov 0.0   ;;  %v635_v3 = vld [vmem:[%s296_s30 + $0x8] sm:$0xff]   ;;  %vm679_vm0 = vmmov 0   ;;  %vm350_vm1 = vcmask 261120   ;;  %p575_p9 = scmp.ne.s32.totalorder %s659_s15, 3 }
  0x1f   : > { %583 = vmatprep.subr.bf16.mxu0 %v678_v2  ;;  %587 = vmatprep.mubr.msk.bf16.mxu0 %vm679_vm0, %v678_v2  ;;  %v636_v4 = vld [vmem:[%s288_s8] sm:$0xff]   ;;  %v326_v7 = vld [vmem:[#allocation2 + $0x8] sm:$0xff] }
  0x20   : > { %584 = vmatpush3.bf16.msra.mxu0 %v634_v1  ;;  %v325_v5 = vld [vmem:[#allocation2] sm:$0xff]  ;;  %v415_v18 = vld [vmem:[%s748_s12 + $0x8] sm:$0xff] (!%p575_p9) }
  0x21   : > { %585 = vmatprep.subr.bf16.mxu0 %v678_v2  ;;  %v576_v14 = vld [vmem:[%s781_s2] ss:$0 sm:$0xff] (!%p575_p9) }
  0x22   : > { %v414_v15 = vld [vmem:[%s748_s12] sm:$0xff] (!%p575_p9) }
  0x24   : > { %586 = vmatpush3.bf16.msra.mxu0 %v635_v3 }
  0x27   : > { %588 = vmatmul.mubr.msk.bf16.vlgmr.msra.gmra.mrb[0].mxu0 %vm350_vm1, %v636_v4 }
  0xf9   : > { %402 = sbr.rel (%p575_p9) target bundleno = 268 (0x10c), region = 44 }
  0xfa   : > { %v388_v6 = vpop.f32.mrb[0].mxu0 }
  0xfb   : > { %v395_v8 = vadd.f32 %v388_v6, %v325_v5  ;;  %v589_v9 = vpop.f32.mrb[1].mxu0 }
  0xfc   : > { %v391_v10 = vpop.f32.mrb[2].mxu0 }
  0xfd   : > { %397 = vst [vmem:[#allocation2] sm:$0xff] %v395_v8  ;;  %v396_v11 = vadd.f32 %v391_v10, %v326_v7  ;;  %v590_v12 = vpop.f32.mrb[3].mxu0 }
  0xff   : > { %398 = vst [vmem:[#allocation2 + $0x8] sm:$0xff] %v396_v11 }
 0x104   : > { %v403_v13 = vld [vmem:[#allocation2] sm:$0xff] }
 0x105   : > { %v412_v16 = vadd.f32 %v576_v14, %v403_v13 }
 0x106   : > { %v404_v17 = vld [vmem:[#allocation2 + $0x8] sm:$0xff] }
 0x107   : > { %v413_v19 = vadd.f32 %v576_v14, %v404_v17  ;;  %v416_v20 = vadd.f32 %v414_v15, %v412_v16 }
 0x109   : > { %v417_v21 = vadd.f32 %v415_v18, %v413_v19  ;;  %418 = vst [vmem:[%s753_s16] sm:$0xff] %v416_v20 }
 0x10b   : > { %419 = vst [vmem:[%s753_s16 + $0x8] sm:$0xff] %v417_v21 }
 0x10c PF: > { %s14_s19 = sadd.s32 1, %s675_s19   ;;  %s784_s15 = smov %s667_s17 }
 0x10d   : > { %p11_p10 = scmp.ge.s32.totalorder %s14_s19, 10   ;;  %s785_s16 = smov %s671_s18 }
 0x10e   : > { %s786_s17 = smov %s789_s20  ;;  %s787_s18 = smov %s793_s21 }
 0x10f   :  { %13 = sbr.rel (!%p11_p10) target bundleno = 3 (0x3), region = 83 }

// kernel: phi2_block_forward.8
= control target key start
LH: loop header
LB: loop body
LE: loop exit
PB: predicated region body
PF: predicated region fallthrough
CT: control target
= control target key end

     0   :  { %s963_s18 = smov 0   ;;  %s965_s19 = smov 0   ;;  %s1124_s0 = inlined_call_operand.vmem [shape: f32[32,128], index: 0, kind: input, shape index: {}]   ;;  %s1125_s1 = inlined_call_operand.vmem [shape: f32[1,128], index: 1, kind: input, shape index: {}]   ;;  %s1126_s2 = inlined_call_operand.vmem [shape: f32[1,128], index: 2, kind: input, shape index: {}]   ;;  %s1127_s3 = inlined_call_operand.vmem [shape: bf16[128,512], index: 3, kind: input, shape index: {}]   ;;  %s1128_s4 = inlined_call_operand.vmem [shape: f32[1,512], index: 4, kind: input, shape index: {}]   ;;  %s1129_s5 = inlined_call_operand.vmem [shape: bf16[32,512], index: 5, kind: output, shape index: {}]  }
   0x1   :  { %s967_s20 = smov 0   ;;  %s969_s21 = smov 0  }
   0x2   :  { %s971_s22 = smov 0   ;;  %s973_s23 = smov 0  }
   0x3   :  { %s975_s24 = smov 0   ;;  %s977_s25 = smov 0  }
   0x4   :  { %s979_s26 = smov 0  }
   0x5 LB: > { %s702_s27 = sadd.s32 4294967295, %s929_s26   ;;  %s24_s28 = sadd.s32 1, %s921_s24  ;;  %s929_s26 = sphi %s979_s26, %s15_s26   ;;  %s925_s25 = sphi %s977_s25, %s1138_s25   ;;  %s921_s24 = sphi %s975_s24, %s1137_s24   ;;  %s917_s23 = sphi %s973_s23, %s1136_s23   ;;  %s913_s22 = sphi %s971_s22, %s1135_s22   ;;  %s909_s21 = sphi %s969_s21, %s1134_s21   ;;  %s905_s20 = sphi %s967_s20, %s1133_s20   ;;  %s901_s19 = sphi %s965_s19, %s1132_s19   ;;  %s897_s18 = sphi %s963_s18, %s1131_s18  }
   0x6   : > { %p25_p0 = scmp.ge.s32.totalorder %s24_s28, 4  ;;  %s27_s29 = sadd.s32 1, %s925_s25 }
   0x7   : > { %s102_s30 = sadd.s32 1, %s909_s21  ;;  %p109_p1 = scmp.ne.s32.totalorder %s909_s21, %s905_s20 }
   0x8   : > { %s1140_s28 = smov (%p25_p0, %s24_s28), 0  ;;  %s1142_s29 = smov (!%p25_p0, %s27_s29), %s925_s25 }
   0x9   : > { %s99_s6 = ssub.s32 %s921_s24, %s1140_s28  ;;  %p110_p2 = scmp.eq.s32.totalorder %s929_s26, 0 }
   0xa   : > { %p29_p3 = scmp.ge.s32.totalorder %s1142_s29, 2  ;;  %p100_p4 = scmp.eq.s32.totalorder %s99_s6, 0 }
   0xb   : > { %p111_p5 = por %p110_p2, %p109_p1  ;;  %s156_s7 = sadd.s32 1, %s901_s19 }
   0xc   : > { %s1144_s29 = smov (%p29_p3, %s1142_s29), 0  ;;  %p166_p6 = scmp.ne.s32.totalorder %s901_s19, %s897_s18 }
   0xd   : > { %s1024_s8 = scalar_select %p100_p4, %s909_s21, %s102_s30  }
   0xe   : > { %s151_s9 = ssub.s32 %s925_s25, %s1144_s29  ;;  %p167_p7 = scmp.eq.s32.totalorder %s702_s27, 7 }
   0xf   : > { %s153_s10 = sor.u32 %s151_s9, %s99_s6  ;;  %p705_p10 = scmp.ge.s32.totalorder %s929_s26, 8 }
  0x10   : > { %p154_p8 = scmp.eq.s32.totalorder %s153_s10, 0  ;;  %p1030_p9 = por %p167_p7, %p166_p6 }
  0x11   : > { %195 = sbr.rel (%p705_p10) target bundleno = 39 (0x27), region = 24 }
  0x12   : > { %s1035_s12 = scalar_select %p154_p8, %s901_s19, %s156_s7  }
  0x18   : > { %207 = sbr.rel (!%p111_p5) target bundleno = 39 (0x27), region = 32  ;;  %s209_s13 = sand.u32 (%p111_p5), 1, %s909_s21  }
  0x19   : > { %s707_s14 = sshll.u32 (%p111_p5), %s921_s24, 2  ;;  %s706_s15 = sshll.u32 (%p111_p5), %s209_s13, 6 }
  0x1a   : > { %s1043_s27 = scalar_lea.vmem (%p111_p5), %s1127_s3, %s707_s14  ;;  %s211_s30 = scalar_lea.vmem (%p111_p5), [#allocation2], %s706_s15 }
  0x1b   : > { %v229_v0 = vld [vmem:[%s1043_s27] sm:$0xf] (%p111_p5)  ;;  %v231_v1 = vld [vmem:[%s1043_s27 + $0x10] sm:$0xf] (%p111_p5) }
  0x1c   : > { %230 = vst [vmem:[%s211_s30] sm:$0xf] (%p111_p5), %v229_v0  ;;  %232 = vst [vmem:[%s211_s30 + $0x4] sm:$0xf] (%p111_p5), %v231_v1  ;;  %v233_v2 = vld [vmem:[%s1043_s27 + $0x20] sm:$0xf] (%p111_p5) }
  0x1d   : > { %v235_v3 = vld [vmem:[%s1043_s27 + $0x30] sm:$0xf] (%p111_p5)  ;;  %v237_v4 = vld [vmem:[%s1043_s27 + $0x40] sm:$0xf] (%p111_p5)  ;;  %234 = vst [vmem:[%s211_s30 + $0x8] sm:$0xf] (%p111_p5), %v233_v2 }
  0x1e   : > { %236 = vst [vmem:[%s211_s30 + $0xc] sm:$0xf] (%p111_p5), %v235_v3  ;;  %238 = vst [vmem:[%s211_s30 + $0x10] sm:$0xf] (%p111_p5), %v237_v4  ;;  %v239_v5 = vld [vmem:[%s1043_s27 + $0x50] sm:$0xf] (%p111_p5) }
  0x1f   : > { %v241_v6 = vld [vmem:[%s1043_s27 + $0x60] sm:$0xf]  ;;  %v243_v7 = vld [vmem:[%s1043_s27 + $0x70] sm:$0xf]  ;;  %240 = vst [vmem:[%s211_s30 + $0x14] sm:$0xf] %v239_v5 }
  0x20   : > { %242 = vst [vmem:[%s211_s30 + $0x18] sm:$0xf] %v241_v6  ;;  %244 = vst [vmem:[%s211_s30 + $0x1c] sm:$0xf] %v243_v7  ;;  %v245_v8 = vld [vmem:[%s1043_s27 + $0x80] sm:$0xf] }
  0x21   : > { %v247_v9 = vld [vmem:[%s1043_s27 + $0x90] sm:$0xf]  ;;  %v249_v10 = vld [vmem:[%s1043_s27 + $0xa0] sm:$0xf]  ;;  %246 = vst [vmem:[%s211_s30 + $0x20] sm:$0xf] %v245_v8 }
  0x22   : > { %248 = vst [vmem:[%s211_s30 + $0x24] sm:$0xf] %v247_v9  ;;  %250 = vst [vmem:[%s211_s30 + $0x28] sm:$0xf] %v249_v10  ;;  %v251_v11 = vld [vmem:[%s1043_s27 + $0xb0] sm:$0xf] }
  0x23   : > { %v253_v12 = vld [vmem:[%s1043_s27 + $0xc0] sm:$0xf]  ;;  %v255_v13 = vld [vmem:[%s1043_s27 + $0xd0] sm:$0xf]  ;;  %252 = vst [vmem:[%s211_s30 + $0x2c] sm:$0xf] %v251_v11 }
  0x24   : > { %254 = vst [vmem:[%s211_s30 + $0x30] sm:$0xf] %v253_v12  ;;  %256 = vst [vmem:[%s211_s30 + $0x34] sm:$0xf] %v255_v13  ;;  %v257_v14 = vld [vmem:[%s1043_s27 + $0xe0] sm:$0xf] }
  0x25   : > { %v259_v15 = vld [vmem:[%s1043_s27 + $0xf0] sm:$0xf]  ;;  %258 = vst [vmem:[%s211_s30 + $0x38] sm:$0xf] %v257_v14 }
  0x26   : > { %260 = vst [vmem:[%s211_s30 + $0x3c] sm:$0xf] %v259_v15 }
  0x27 PF: > { %p708_p11 = scmp.ge.s32.totalorder %s929_s26, 1  ;;  %p320_p12 = scmp.lt.s32.totalorder %s929_s26, 9 }
  0x29   : > { %p321_p13 = pnand %p708_p11, %p320_p12 }
  0x2a   : > { %s711_s6 = sshll.u32 (!%p321_p13), %s917_s23, 1  ;;  %s327_s14 = sand.u32 (!%p321_p13), 1, %s905_s20   ;;  %v931_v18 = vmov (!%p321_p13), 0.0   ;;  %vm932_vm0 = vmmov (!%p321_p13), 0   ;;  %v713_v43 = vld [vmem:[%s1125_s1] ss:$0 sm:$0xff] (!%p321_p13) }
  0x2b   : > { %324 = sbr.rel (%p321_p13) target bundleno = 623 (0x26f), region = 77  ;;  %p362_p0 = scmp.lt.s32.totalorder (!%p321_p13), %s711_s6, 3  ;;  %749 = vmatprep.subr.bf16.mxu0 (!%p321_p13), %v931_v18  ;;  %765 = vmatprep.mubr.msk.bf16.mxu0 (!%p321_p13), %vm932_vm0, %v931_v18  ;;  %v714_v47 = vld [vmem:[%s1126_s2] ss:$0 sm:$0xff] (!%p321_p13) }
  0x2c   : > { %s709_s15 = sshll.u32 (!%p321_p13), %s327_s14, 6  ;;  %p367_p1 = scmp.lt.s32.totalorder (!%p321_p13), %s913_s22, 3 }
  0x2d   : > { %s1068_s16 = scalar_lea.vmem (!%p321_p13), [#allocation2], %s709_s15 }
  0x2e   : > { %v843_v19 = vld [vmem:[%s1068_s16] sm:$0xff] (!%p321_p13)   ;;  %v844_v28 = vld [vmem:[%s1068_s16 + $0x8] sm:$0xff] (!%p321_p13)   ;;  %v845_v29 = vld [vmem:[%s1068_s16 + $0x10] sm:$0xff] (!%p321_p13)  }
  0x2f   : > { %750 = vmatpush3.bf16.msra.mxu0 (!%p321_p13), %v843_v19  ;;  %v846_v30 = vld [vmem:[%s1068_s16 + $0x18] sm:$0xff] (!%p321_p13)   ;;  %v847_v31 = vld [vmem:[%s1068_s16 + $0x20] sm:$0xff] (!%p321_p13)   ;;  %v848_v32 = vld [vmem:[%s1068_s16 + $0x28] sm:$0xff] (!%p321_p13)  }
  0x30   : > { %751 = vmatprep.subr.bf16.mxu0 (!%p321_p13), %v931_v18  ;;  %v849_v33 = vld [vmem:[%s1068_s16 + $0x30] sm:$0xff] (!%p321_p13)   ;;  %v850_v34 = vld [vmem:[%s1068_s16 + $0x38] sm:$0xff] (!%p321_p13)  }
  0x32   : > { %s1146_s6 = smov (!%p362_p0, %s711_s6), 3  ;;  %s734_s16 = sshll.u32 (%p1030_p9), %s917_s23, 3 }
  0x33   : > { %s712_s7 = sshll.u32 %s1146_s6, 3  ;;  %752 = vmatpush3.bf16.msra.mxu0 %v844_v28  ;;  %s565_s20 = sadd.s32 (%p1030_p9), %s913_s22, %s734_s16 }
  0x34   : > { %s365_s13 = scalar_lea.vmem %s1124_s0, %s712_s7  ;;  %753 = vmatprep.subr.bf16.mxu0 %v931_v18 }
  0x35   : > { %v372_v16 = vld [vmem:[%s365_s13] sm:$0xff]  ;;  %v373_v17 = vld [vmem:[%s365_s13 + $0x8] sm:$0xff]  ;;  %s368_s6 = scalar_select %p367_p1, %s913_s22, 3 }
  0x36   : > { %374 = vadd.xlane.f32.xlu0 %v372_v16  ;;  %s358_s13 = sand.u32 1, %s897_s18   ;;  %s729_s18 = sshll.u32 (%p1030_p9), %s565_s20, 2 }
  0x37   : > { %754 = vmatpush3.bf16.msra.mxu0 %v845_v29  ;;  %s369_s10 = scalar_lea.vmem %s1128_s4, %s368_s6  ;;  %s710_s14 = sshll.u32 %s358_s13, 3 }
  0x38   : > { %755 = vmatprep.subr.bf16.mxu0 %v931_v18  ;;  %v715_v52 = vld [vmem:[%s369_s10] ss:$0 sm:$0xff]  ;;  %s360_s15 = scalar_lea.vmem [#allocation3], %s710_s14  ;;  %s567_s30 = scalar_lea.vmem (%p1030_p9), %s1129_s5, %s729_s18 }
  0x3a   : > { %376 = vadd.xlane.f32.xlu0 %v373_v17 }
  0x3b   : > { %756 = vmatpush3.bf16.msra.mxu0 %v846_v30 }
  0x3c   : > { %757 = vmatprep.subr.bf16.mxu0 %v931_v18 }
  0x3f   : > { %758 = vmatpush3.bf16.msra.mxu0 %v847_v31 }
  0x40   : > { %759 = vmatprep.subr.bf16.mxu0 %v931_v18 }
  0x43   : > { %760 = vmatpush3.bf16.msra.mxu0 %v848_v32 }
  0x44   : > { %761 = vmatprep.subr.bf16.mxu0 %v931_v18 }
  0x47   : > { %762 = vmatpush3.bf16.msra.mxu0 %v849_v33 }
  0x48   : > { %763 = vmatprep.subr.bf16.mxu0 %v931_v18 }
  0x4b   : > { %764 = vmatpush3.bf16.msra.mxu0 %v850_v34 }
  0xc3   : > { %v375_v20 = vpop.xlane.xlu0 %374 }
  0xc4   : > { %v379_v21 = vmul.f32 0.0078125, %v375_v20 }
  0xc6   : > { %v381_v22 = vsub.f32 %v372_v16, %v379_v21 }
  0xc7   : > { %v377_v23 = vpop.xlane.xlu0 %376 }
  0xc8   : > { %v380_v24 = vmul.f32 0.0078125, %v377_v23  ;;  %v383_v25 = vmul.f32 %v381_v22, %v381_v22 }
  0xca   : > { %v382_v26 = vsub.f32 %v373_v17, %v380_v24  ;;  %385 = vadd.xlane.f32.xlu1 %v383_v25 }
  0xcc   : > { %v384_v27 = vmul.f32 %v382_v26, %v382_v26 }
  0xce   : > { %387 = vadd.xlane.f32.xlu1 %v384_v27 }
 0x157   : > { %v386_v35 = vpop.xlane.xlu1 %385 }
 0x158   : > { %v389_v36 = vmul.f32 0.0078125, %v386_v35 }
 0x15a   : > { %v391_v37 = vadd.f32 1e-05, %v389_v36 }
 0x15b   : > { %v388_v38 = vpop.xlane.xlu1 %387 }
 0x15c   : > { %851 = vrsqrt.f32 %v391_v37  ;;  %v390_v39 = vmul.f32 0.0078125, %v388_v38 }
 0x15e   : > { %v392_v40 = vadd.f32 1e-05, %v390_v39 }
 0x160   : > { %853 = vrsqrt.f32 %v392_v40 }
 0x166   : > { %v852_v41 = vpop.eup %851 }
 0x167   : > { %v395_v42 = vmul.f32 %v852_v41, %v381_v22 }
 0x169   : > { %v404_v46 = vmul.f32 %v713_v43, %v395_v42 }
 0x16a   : > { %v854_v44 = vpop.eup %853 }
 0x16b   : > { %v396_v45 = vmul.f32 %v854_v44, %v382_v26  ;;  %v413_v49 = vadd.f32 %v714_v47, %v404_v46 }
 0x16d   : > { %v405_v48 = vmul.f32 %v713_v43, %v396_v45 }
 0x16f   : > { %v414_v50 = vadd.f32 %v714_v47, %v405_v48 }
 0x171   : > { %v415_v51 = vpack.c.bf16 %v414_v50, %v413_v49 }
 0x173   : > { %766 = vmatmul.mubr.bf16.vlgmr.msra.gmra.mrb[0].mxu0 %v415_v51 }
 0x246   : > { %v521_v53 = vpop.f32.mrb[0].mxu0 }
 0x247   : > { %v522_v54 = vadd.f32 %v715_v52, %v521_v53  ;;  %v767_v55 = vpop.f32.mrb[1].mxu0 }
 0x248   : > { %v524_v56 = vpop.f32.mrb[2].mxu0 }
 0x249   : > { %v530_v57 = vmul.f32 0.044715, %v522_v54  ;;  %v525_v58 = vadd.f32 %v715_v52, %v524_v56  ;;  %v768_v59 = vpop.f32.mrb[3].mxu0  ;;  %v528_v8 = vmul.f32 0.5, %v522_v54 }
 0x24b   : > { %v532_v60 = vmul.f32 %v530_v57, %v522_v54  ;;  %v531_v61 = vmul.f32 0.044715, %v525_v58  ;;  %v529_v9 = vmul.f32 0.5, %v525_v58 }
 0x24d   : > { %v534_v62 = vmul.f32 %v532_v60, %v522_v54  ;;  %v533_v63 = vmul.f32 %v531_v61, %v525_v58 }
 0x24f   : > { %v536_v0 = vadd.f32 %v534_v62, %v522_v54  ;;  %v535_v1 = vmul.f32 %v533_v63, %v525_v58 }
 0x251   : > { %v538_v2 = vmul.f32 0.7978846, %v536_v0  ;;  %v537_v3 = vadd.f32 %v535_v1, %v525_v58 }
 0x253   : > { %855 = vtanh.f32 %v538_v2  ;;  %v539_v4 = vmul.f32 0.7978846, %v537_v3 }
 0x255   : > { %857 = vtanh.f32 %v539_v4 }
 0x25d   : > { %v856_v5 = vpop.eup %855 }
 0x25e   : > { %v542_v6 = vadd.f32 1.0, %v856_v5 }
 0x25f   : > { %v858_v7 = vpop.eup %857 }
 0x260   : > { %v543_v10 = vadd.f32 1.0, %v858_v7  ;;  %v544_v11 = vmul.f32 %v542_v6, %v528_v8  ;;  %562 = sbr.rel (!%p1030_p9) target bundleno = 623 (0x26f), region = 85 }
 0x262   : > { %v545_v12 = vmul.f32 %v543_v10, %v529_v9 }
 0x264   : > { %v738_v13 = vpack.c.bf16 %v545_v12, %v544_v11 }
 0x266   : > { %739 = vst [vmem:[%s360_s15] sm:$0xff] %v738_v13  }
 0x26d   : > { %v583_v14 = vld [vmem:[%s360_s15] sm:$0xf]  ;;  %v585_v15 = vld [vmem:[%s360_s15 + $0x4] sm:$0xf] }
 0x26e   : > { %584 = vst [vmem:[%s567_s30] sm:$0xf] %v583_v14  ;;  %586 = vst [vmem:[%s567_s30 + $0x10] sm:$0xf] %v585_v15 }
 0x26f PF: > { %s15_s26 = sadd.s32 1, %s929_s26   ;;  %s1131_s18 = smov %s901_s19 }
 0x270   : > { %p12_p2 = scmp.ge.s32.totalorder %s15_s26, 10   ;;  %s1132_s19 = smov %s1035_s12 }
 0x271   : > { %s1133_s20 = smov %s909_s21  ;;  %s1134_s21 = smov %s1024_s8 }
 0x272   : > { %s1135_s22 = smov %s921_s24  ;;  %s1136_s23 = smov %s925_s25 }
 0x273   : > { %s1137_s24 = smov %s1140_s28  ;;  %s1138_s25 = smov %s1144_s29 }
 0x274   :  { %14 = sbr.rel (!%p12_p2) target bundleno = 5 (0x5), region = 163 }

// kernel: phi2_block_forward.6
= control target key start
LH: loop header
LB: loop body
LE: loop exit
PB: predicated region body
PF: predicated region fallthrough
CT: control target
= control target key end

     0   :  { %s1485_s0 = inlined_call_operand.vmem [shape: bf16[3,2,4,16,32], index: 0, kind: input, shape index: {}, may-alias: {0,1,2}]   ;;  %s1486_s1 = inlined_call_operand.vmem [shape: bf16[3,2,4,16,32], index: 1, kind: input, shape index: {}, may-alias: {0,1,2}]   ;;  %s1487_s2 = inlined_call_operand.vmem [shape: bf16[3,2,4,16,32], index: 2, kind: input, shape index: {}, may-alias: {0,1,2}]   ;;  %s1488_s3 = inlined_call_operand.vmem [shape: f32[2,16,32], index: 3, kind: input, shape index: {}, may-alias: {3,4}]   ;;  %s1489_s4 = inlined_call_operand.vmem [shape: f32[2,16,32], index: 4, kind: input, shape index: {}, may-alias: {3,4}]   ;;  %s1490_s5 = inlined_call_operand.vmem [shape: bf16[2,4,16,32], index: 5, kind: output, shape index: {}]  }
   0x1   :  { %1498 = sst [smem:[#allocation18_spill]] %s1488_s3 }
   0x2   :  { %1499 = sst [smem:[#allocation19_spill]] %s1489_s4 }
   0x3   :  { %s1252_s18 = smov 0   ;;  %s1254_s19 = smov 0  }
   0x4   :  { %s1256_s20 = smov 0   ;;  %s1258_s21 = smov 0  }
   0x5   :  { %s1260_s22 = smov 0   ;;  %s1262_s23 = smov 0  }
   0x6   :  { %s1264_s24 = smov 0   ;;  %s1266_s25 = smov 0  }
   0x7   :  { %s1268_s26 = smov 0   ;;  %s1270_s27 = smov 0  }
   0x8   :  { %s1272_s28 = smov 0   ;;  %s1274_s29 = smov 0  }
   0x9   :  { %s1276_s30 = smov 0  }
   0xa LB: > { %1500 = sst [smem:[#allocation8_spill]] %s1174_s21  ;;  %s30_s6 = sadd.s32 1, %s1194_s26  ;;  %s1210_s30 = sphi %s1276_s30, %s15_s30   ;;  %s1206_s29 = sphi %s1274_s29, %s1526_s29   ;;  %s1202_s28 = sphi %s1272_s28, %s1525_s28   ;;  %s1198_s27 = sphi %s1270_s27, %s1524_s27   ;;  %s1194_s26 = sphi %s1268_s26, %s1523_s26   ;;  %s1190_s25 = sphi %s1266_s25, %s1522_s25   ;;  %s1186_s24 = sphi %s1264_s24, %s1521_s24   ;;  %s1182_s23 = sphi %s1262_s23, %s1531_s23   ;;  %s1178_s22 = sphi %s1260_s22, %s1530_s22   ;;  %s1174_s21 = sphi %s1258_s21, %s1518_s21   ;;  %s1170_s20 = sphi %s1256_s20, %s1517_s20   ;;  %s1166_s19 = sphi %s1254_s19, %s1529_s19   ;;  %s1162_s18 = sphi %s1252_s18, %s1528_s18  }
   0xb   : > { %1501 = sst [smem:[#allocation9_spill]] %s1194_s26  ;;  %s33_s7 = sadd.s32 1, %s1198_s27 }
   0xc   : > { %1502 = sst [smem:[#allocation10_spill]] %s1198_s27  ;;  %p31_p0 = scmp.ge.s32.totalorder %s30_s6, 2 }
   0xd   : > { %1503 = sst [smem:[#allocation11_spill]] %s1202_s28  ;;  %s37_s8 = sadd.s32 1, %s1202_s28 }
   0xe   : > { %1504 = sst [smem:[#allocation12_spill]] %s1206_s29  ;;  %s41_s9 = sadd.s32 1, %s1206_s29 }
   0xf   : > { %s138_s10 = sadd.s32 1, %s1174_s21  ;;  %s1533_s6 = smov (%p31_p0, %s30_s6), 0 }
  0x10   : > { %1505 = sst [smem:[#allocation13_spill]] %s1533_s6  ;;  %s1535_s7 = smov (!%p31_p0, %s33_s7), %s1198_s27 }
  0x11   : > { %p145_p1 = scmp.ne.s32.totalorder %s1174_s21, %s1170_s20  ;;  %p146_p2 = scmp.eq.s32.totalorder %s1210_s30, 0 }
  0x12   : > { %p35_p3 = scmp.ge.s32.totalorder %s1535_s7, 2  ;;  %s161_s11 = ssub.s32 %s1194_s26, %s1533_s6 }
  0x13   : > { %p1332_p4 = por %p146_p2, %p145_p1  ;;  %p162_p5 = scmp.eq.s32.totalorder %s161_s11, 0 }
  0x14   : > { %s1537_s7 = smov (%p35_p3, %s1535_s7), 0  ;;  %s1539_s8 = smov (!%p35_p3, %s37_s8), %s1202_s28 }
  0x15   : > { %1507 = sst [smem:[#allocation14_spill]] %s1537_s7  ;;  %s135_s13 = ssub.s32 %s1198_s27, %s1537_s7 }
  0x16   : > { %s164_s14 = sadd.s32 1, %s1166_s19  ;;  %p39_p6 = scmp.ge.s32.totalorder %s1539_s8, 4 }
  0x17   : > { %p136_p7 = scmp.eq.s32.totalorder %s135_s13, 0  ;;  %p171_p9 = scmp.ne.s32.totalorder %s1166_s19, %s1162_s18 }
  0x18   : > { %s1343_s15 = scalar_select %p162_p5, %s1166_s19, %s164_s14  }
  0x19   : > { %s1541_s8 = smov (%p39_p6, %s1539_s8), 0  ;;  %s1543_s9 = smov (!%p39_p6, %s41_s9), %s1206_s29 }
  0x1a   : > { %1508 = sst [smem:[#allocation15_spill]] %s1541_s8  ;;  %p43_p8 = scmp.ge.s32.totalorder %s1543_s9, 2 }
  0x1b   : > { %s1349_s16 = scalar_select %p136_p7, %s1174_s21, %s138_s10  }
  0x1c   : > { %s1545_s9 = smov (%p43_p8, %s1543_s9), 0  ;;  %p1357_p10 = por %p171_p9, %p146_p2 }
  0x1d   : > { %1509 = sst [smem:[#allocation16_spill]] %s1349_s16  ;;  %p936_p11 = scmp.ge.s32.totalorder %s1210_s30, 32 }
  0x1e   : > { %1510 = sst [smem:[#allocation17_spill]] %s1545_s9 }
  0x1f   : > { %227 = sbr.rel (%p936_p11) target bundleno = 60 (0x3c), region = 16 }
  0x26   : > { %277 = sbr.rel (!%p1332_p4) target bundleno = 49 (0x31), region = 32  ;;  %s279_s11 = sand.u32 (%p1332_p4), 1, %s1174_s21  }
  0x27   : > { %s938_s10 = sshll.u32 (%p1332_p4), %s1198_s27, 3  ;;  %s937_s13 = sshll.u32 (%p1332_p4), %s279_s11, 4 }
  0x28   : > { %s1512_s3 = sld [smem:[#allocation18_spill]] (%p1332_p4)  ;;  %s281_s7 = scalar_lea.vmem (%p1332_p4), [#allocation6], %s937_s13 }
  0x2e   : > { %s283_s9 = scalar_lea.vmem %s1512_s3, %s938_s10 }
  0x2f   : > { %v313_v0 = vld [vmem:[%s283_s9] sm:$0xff]  ;;  %v315_v1 = vld [vmem:[%s283_s9 + $0x10] sm:$0xff] }
  0x30   : > { %314 = vst [vmem:[%s281_s7] sm:$0xff] %v313_v0  ;;  %316 = vst [vmem:[%s281_s7 + $0x8] sm:$0xff] %v315_v1 }
  0x31 PF: > { %322 = sbr.rel (!%p1357_p10) target bundleno = 60 (0x3c), region = 70  ;;  %s324_s12 = sand.u32 (%p1357_p10), 1, %s1166_s19  }
  0x32   : > { %s940_s6 = sshll.u32 (%p1357_p10), %s1194_s26, 3  ;;  %s939_s29 = sshll.u32 (%p1357_p10), %s324_s12, 4 }
  0x33   : > { %s1513_s4 = sld [smem:[#allocation19_spill]] (%p1357_p10)  ;;  %s326_s8 = scalar_lea.vmem (%p1357_p10), [#allocation7], %s939_s29 }
  0x39   : > { %s328_s27 = scalar_lea.vmem %s1513_s4, %s940_s6 }
  0x3a   : > { %v358_v2 = vld [vmem:[%s328_s27] sm:$0xff]  ;;  %v360_v3 = vld [vmem:[%s328_s27 + $0x10] sm:$0xff] }
  0x3b   : > { %359 = vst [vmem:[%s326_s8] sm:$0xff] %v358_v2  ;;  %361 = vst [vmem:[%s326_s8 + $0x8] sm:$0xff] %v360_v3 }
  0x3c PF: > { %p941_p12 = scmp.ge.s32.totalorder %s1210_s30, 1  ;;  %p366_p13 = scmp.lt.s32.totalorder %s1210_s30, 33 }
  0x3e   : > { %p367_p0 = pnand %p941_p12, %p366_p13 }
  0x3f   : > { %s373_s27 = sand.u32 (!%p367_p0), 1, %s1170_s20   ;;  %s380_s28 = sand.u32 (!%p367_p0), 1, %s1162_s18  }
  0x40   : > { %370 = sbr.rel (%p367_p0) target bundleno = 1216 (0x4c0), region = 108  ;;  %s1380_s29 = sshll.u32 (!%p367_p0), %s373_s27, 4 }
  0x41   : > { %s1382_s6 = sshll.u32 (!%p367_p0), %s380_s28, 4  ;;  %p456_p1 = scmp.lt.s32.totalorder (!%p367_p0), %s1190_s25, 1 }
  0x42   : > { %p458_p2 = scmp.lt.s32.totalorder (!%p367_p0), %s1186_s24, 3  ;;  %p460_p3 = scmp.lt.s32.totalorder (!%p367_p0), %s1182_s23, 1 }
  0x43   : > { %p472_p4 = scmp.lt.s32.totalorder (!%p367_p0), %s1178_s22, 1  ;;  %s956_s20 = sshll.u32 (!%p367_p0), %s1182_s23, 3 }
  0x44   : > { %s375_s12 = scalar_lea.vmem (!%p367_p0), [#allocation6], %s1380_s29  ;;  %s382_s11 = scalar_lea.vmem (!%p367_p0), [#allocation7], %s1382_s6 }
  0x45   : > { %p958_p5 = scmp.ne.s32.totalorder (!%p367_p0), %s1178_s22, 0 }
  0x47   : > { %s1547_s25 = smov (!%p456_p1, %s1190_s25), 1  ;;  %s1549_s24 = smov (!%p458_p2, %s1186_s24), 3 }
  0x48   : > { %s461_s7 = scalar_select %p460_p3, %s1182_s23, 1 }
  0x49   : > { %s944_s9 = sshll.u32 %s1549_s24, 1  ;;  %s945_s17 = sshll.u32 %s1547_s25, 3  ;;  %vm513_vm0 = vcmask (!%p958_p5), 7168   ;;  %v1213_v6 = vmov (!%p958_p5), -1e+30   ;;  %v1214_v7 = vmov (!%p958_p5), 0.0  }
  0x4a   : > { %s463_s10 = sadd.s32 %s944_s9, %s461_s7  ;;  %514 = vst.msk [vmem:[#allocation2] sm:$0xff] (!%p958_p5), %vm513_vm0, %v1213_v6  ;;  %515 = vst.msk [vmem:[#allocation3] sm:$0xff] (!%p958_p5), %vm513_vm0, %v1214_v7  ;;  %vm516_vm1 = vcmask (!%p958_p5), 261120   ;;  %s1215_s21 = smov (!%p958_p5), 8   ;;  %v520_v9 = vld [vmem:[%s375_s12] sm:$0xff] (!%p958_p5)  ;;  %vm530_vm2 = vcmask (!%p958_p5), 64512  }
  0x4b   : > { %s465_s13 = sadd.s32 %s945_s17, %s463_s10  ;;  %517 = vst.msk [vmem:[#allocation4] sm:$0xff] (!%p958_p5), %vm516_vm1, %v1214_v7  ;;  %vm532_vm3 = vcmask (!%p958_p5), 130048   ;;  %v959_v10 = vld [vmem:[%s375_s12 + $0x8] sm:$0xff] (!%p958_p5)  ;;  %vm539_vm4 = vcmask (!%p958_p5), 257024  }
  0x4c   : > { %s946_s14 = sshll.u32 %s465_s13, 2 }
  0x4d   : > { %s467_s8 = scalar_lea.vmem %s1485_s0, %s946_s14  ;;  %s1399_s3 = scalar_lea.vmem %s1490_s5, %s946_s14 }
  0x4e   : > { %s473_s4 = scalar_select %p472_p4, %s1178_s22, 1 }
  0x4f   : > { %512 = sbr.rel (%p958_p5) target bundleno = 212 (0xd4), region = 120  ;;  %v518_v4 = vld [vmem:[%s467_s8] sm:$0xf] (!%p958_p5) }
  0x50   : > { %s827_s26 = sadd.s32 %s944_s9, %s473_s4  ;;  %v519_v5 = vunpack.c.l.bf16 (!%p958_p5), %v518_v4  ;;  %s1212_s4 = smov (!%p958_p5), 120  }
  0x51   : > { %s829_s16 = sadd.s32 %s945_s17, %s827_s26 }
  0x52   : > { %s949_s24 = sshll.u32 %s829_s16, 2  ;;  %524 = vrot.lane.b32.xlu0 (!%p958_p5), %v519_v5, %s1212_s4  ;;  %v534_v13 = vmul.f32 (!%p958_p5), %v520_v9, %v519_v5 }
  0x53   : > { %s1405_s7 = scalar_lea.vmem %s1486_s1, %s949_s24  ;;  %s1410_s18 = scalar_lea.vmem %s1487_s2, %s949_s24 }
  0x56   : > { %527 = vrot.lane.b32.xlu0 %v519_v5, %s1215_s21 }
  0xc4   : > { %v525_v8 = vpop.permute.xlu0 %524 }
  0xc8   : > { %v528_v11 = vpop.permute.xlu0 %527 }
  0xc9   : > { %v531_v12 = vsel %vm530_vm2, %v525_v8, %v528_v11 }
  0xca   : > { %v533_v14 = vsel %vm532_vm3, %v531_v12, %v519_v5 }
  0xcb   : > { %v535_v15 = vmul.f32 %v959_v10, %v533_v14 }
  0xcd   : > { %v536_v16 = vadd.f32 %v535_v15, %v534_v13 }
  0xcf   : > { %v537_v17 = vmul.f32 0.17677669, %v536_v16 }
  0xd1   : > { %v538_v18 = vpack.c.bf16 %v537_v17, %v537_v17 }
  0xd3   : > { %540 = vst.msk [vmem:[#allocation5] sm:$0xf] %vm539_vm4, %v538_v18 }
  0xd4 PF: > { %s541_s26 = sadd.s32 7, %s956_s20  ;;  %s1514_s16 = sshll.u32 %s1178_s22, 3 }
  0xd5   : > { %p960_p6 = scmp.gt.s32.totalorder %s1514_s16, %s541_s26 }
  0xd6   : > { %v961_v19 = vld [vmem:[%s1405_s7 + $0x40] sm:$0xf] (!%p960_p6)  ;;  %v1216_v21 = vmov (!%p960_p6), 0.0   ;;  %s1217_s29 = smov (!%p960_p6), 120   ;;  %vm1218_vm5 = vmmov (!%p960_p6), 0   ;;  %s1219_s9 = smov (!%p960_p6), 8   ;;  %v614_v34 = vlaneseq (!%p960_p6)  ;;  %v616_v37 = vstv (!%p960_p6), %s956_s20 }
  0xd7   : > { %545 = sbr.rel (%p960_p6) target bundleno = 1070 (0x42e), region = 124  ;;  %v547_v20 = vunpack.c.l.bf16 (!%p960_p6), %v961_v19  ;;  %973 = vmatprep.subr.bf16.mxu0 (!%p960_p6), %v1216_v21  ;;  %979 = vmatprep.subr.bf16.mxu1 (!%p960_p6), %v1216_v21  ;;  %vm558_vm6 = vcmask (!%p960_p6), 64512   ;;  %v548_v23 = vld [vmem:[%s382_s11] sm:$0xff] (!%p960_p6)  ;;  %vm560_vm7 = vcmask (!%p960_p6), 130048   ;;  %v962_v25 = vld [vmem:[%s382_s11 + $0x8] sm:$0xff] (!%p960_p6)  ;;  %vm567_vm8 = vcmask (!%p960_p6), 261120  }
  0xd8   : > { %975 = vmatprep.mubr.msk.bf16.mxu0 (!%p960_p6), %vm1218_vm5, %v1216_v21  ;;  %981 = vmatprep.mubr.msk.bf16.mxu1 (!%p960_p6), %vm1218_vm5, %v1216_v21  ;;  %v615_v35 = vshrl.u32 (!%p960_p6), %v614_v34, 7  ;;  %v619_v36 = vand.u32 (!%p960_p6), 127, %v614_v34  ;;  %s1515_s6 = sshll.u32 (!%p960_p6), %s1178_s22, 3  ;;  %v1220_v47 = vmov (!%p960_p6), 0   ;;  %v624_v48 = vld [vmem:[#allocation2] sm:$0xff] (!%p960_p6)  ;;  %vm646_vm10 = vcmask (!%p960_p6), 7168  }
  0xd9   : > { %552 = vrot.lane.b32.xlu0 (!%p960_p6), %v547_v20, %s1217_s29  ;;  %v562_v27 = vmul.f32 (!%p960_p6), %v548_v23, %v547_v20  ;;  %v620_v38 = vstv (!%p960_p6), %s1515_s6  ;;  %1099 = vset.pattern.permute.xlu1 (!%p960_p6), %v1220_v47  ;;  %v964_v53 = vld [vmem:[%s1410_s18 + $0x80] sm:$0xf] (!%p960_p6)  ;;  %vm660_vm11 = vcmask (!%p960_p6), 1043456   ;;  %v640_v62 = vld [vmem:[#allocation3] sm:$0xff] (!%p960_p6)  ;;  %v648_v2 = vld [vmem:[#allocation4] sm:$0xff] (!%p960_p6) }
  0xda   : > { %v565_v33 = vld [vmem:[#allocation5] sm:$0xf] (!%p960_p6)  ;;  %v617_v39 = vadd.s32 (!%p960_p6), %v616_v37, %v615_v35  ;;  %v621_v40 = vadd.s32 (!%p960_p6), %v620_v38, %v619_v36  ;;  %1100 = vset.pattern.permute.xlu0 (!%p960_p6), %v1220_v47  ;;  %v662_v54 = vsel (!%p960_p6), %vm660_vm11, %v964_v53, 0 }
  0xdb   : > { %980 = vmatpush3.bf16.msra.mxu1 (!%p960_p6), %v662_v54 }
  0xdc   : > { %vm622_vm9 = vcmp.le.s32.totalorder (!%p960_p6), %v621_v40, %v617_v39 }
  0xdd   : > { %555 = vrot.lane.b32.xlu0 (!%p960_p6), %v547_v20, %s1219_s9 }
 0x14b   : > { %v553_v22 = vpop.permute.xlu0 %552 }
 0x14f   : > { %v556_v24 = vpop.permute.xlu0 %555 }
 0x150   : > { %v559_v26 = vsel %vm558_vm6, %v553_v22, %v556_v24 }
 0x151   : > { %v561_v28 = vsel %vm560_vm7, %v559_v26, %v547_v20 }
 0x152   : > { %v563_v29 = vmul.f32 %v962_v25, %v561_v28 }
 0x154   : > { %v564_v30 = vadd.f32 %v563_v29, %v562_v27 }
 0x156   : > { %v566_v31 = vpack.c.bf16 %v564_v30, %v564_v30 }
 0x158   : > { %v572_v32 = vsel %vm567_vm8, %v566_v31, 0 }
 0x159   : > { %974 = vmatpush3.bf16.xpose.msra.mxu0 %v572_v32 }
 0x160   : > { %976 = vmatmul.mubr.msk.bf16.vlgmr.msra.gmra.mrb[0].mxu0 %vm567_vm8, %v565_v33 }
 0x233   : > { %v608_v41 = vpop.f32.mrb[0].mxu0 }
 0x234   : > { %v623_v42 = vsel %vm622_vm9, %v608_v41, -1e+30  ;;  %v977_v43 = vpop.f32.mrb[1].mxu0 }
 0x235   : > { %v611_v44 = vpop.f32.mrb[2].mxu0  ;;  %v625_v45 = vsel %vm558_vm6, %v623_v42, -inf }
 0x236   : > { %626 = vmax.xlane.f32.xlu1 %v625_v45  ;;  %v978_v46 = vpop.f32.mrb[3].mxu0 }
 0x2c3   : > { %v627_v49 = vpop.xlane.xlu1 %626 }
 0x2c4   : > { %v628_v50 = vmax.f32 %v624_v48, %v627_v49 }
 0x2c6   : > { %v629_v51 = vsub.f32 %v624_v48, %v628_v50  ;;  %706 = vst.msk [vmem:[#allocation2] sm:$0xff] %vm646_vm10, %v628_v50  ;;  %634 = vperm.xlu1 %1099, %v628_v50  }
 0x2c8   : > { %v630_v52 = vmul.f32 1.442695, %v629_v51 }
 0x2ca   : > { %1101 = vpow2.f32 %v630_v52 }
 0x2d4   : > { %v1102_v55 = vpop.eup %1101 }
 0x2d5   : > { %651 = vperm.xlu1 %1099, %v1102_v55   ;;  %v641_v63 = vmul.f32 %v1102_v55, %v640_v62 }
 0x345   : > { %v635_v56 = vpop.permute.xlu1 %634 }
 0x346   : > { %v637_v57 = vsub.f32 %v623_v42, %v635_v56 }
 0x348   : > { %v638_v58 = vmul.f32 1.442695, %v637_v57 }
 0x34a   : > { %1103 = vpow2.f32 %v638_v58 }
 0x354   : > { %v1104_v59 = vpop.eup %1103  ;;  %v652_v3 = vpop.permute.xlu1 %651 }
 0x355   : > { %v642_v60 = vsel %vm558_vm6, %v1104_v59, 0.0  ;;  %v655_v61 = vpack.c.bf16 %v1104_v59, %v1104_v59  ;;  %v654_v4 = vmul.f32 %v652_v3, %v648_v2 }
 0x356   : > { %643 = vadd.xlane.f32.xlu0 %v642_v60 }
 0x357   : > { %982 = vmatmul.mubr.msk.bf16.vlgmr.msra.gmra.mrb[0].mxu1 %vm558_vm6, %v655_v61 }
 0x3e3   : > { %v644_v0 = vpop.xlane.xlu0 %643 }
 0x3e4   : > { %v645_v1 = vadd.f32 %v644_v0, %v641_v63 }
 0x3e6   : > { %647 = vst.msk [vmem:[#allocation3] sm:$0xff] %vm646_vm10, %v645_v1 }
 0x42a   : > { %v698_v5 = vpop.f32.mrb[0].mxu1 }
 0x42b   : > { %v704_v6 = vadd.f32 %v698_v5, %v654_v4  ;;  %v983_v7 = vpop.f32.mrb[1].mxu1 }
 0x42c   : > { %v701_v8 = vpop.f32.mrb[2].mxu1 }
 0x42d   : > { %705 = vst.msk [vmem:[#allocation4] sm:$0xff] %vm567_vm8, %v704_v6  ;;  %v984_v9 = vpop.f32.mrb[3].mxu1 }
 0x42e PF: > { %p966_p7 = scmp.ne.s32.totalorder %s1178_s22, 1 }
 0x42f   : > { %v712_v10 = vld [vmem:[#allocation3] sm:$0xff] (!%p966_p7)  ;;  %v1221_v11 = vmov (!%p966_p7), 0   ;;  %vm721_vm12 = vcmask (!%p966_p7), 257024  }
 0x430   : > { %710 = sbr.rel (%p966_p7) target bundleno = 1216 (0x4c0), region = 128  ;;  %1105 = vset.pattern.permute.xlu0 (!%p966_p7), %v1221_v11  ;;  %1106 = vrcp.f32 (!%p966_p7), %v712_v10 }
 0x434   : > { %v711_v13 = vld [vmem:[#allocation4] sm:$0xff] (!%p966_p7) }
 0x43a   : > { %v1107_v12 = vpop.eup %1106 }
 0x43b   : > { %716 = vperm.xlu0 %1105, %v1107_v12  }
 0x4ba   : > { %v717_v14 = vpop.permute.xlu0 %716 }
 0x4bb   : > { %v719_v15 = vmul.f32 %v717_v14, %v711_v13 }
 0x4bd   : > { %v720_v16 = vpack.c.bf16 %v719_v15, %v719_v15 }
 0x4bf   : > { %722 = vst.msk [vmem:[%s1399_s3] sm:$0xf] %vm721_vm12, %v720_v16 }
 0x4c0 PF: > { %s15_s30 = sadd.s32 1, %s1210_s30   ;;  %s1517_s20 = sld [smem:[#allocation8_spill]] }
 0x4c1   : > { %p1441_p8 = scmp.ge.s32.totalorder %s15_s30, 34   ;;  %s1518_s21 = sld [smem:[#allocation16_spill]] }
 0x4c2   : > { %s1519_s23 = sld [smem:[#allocation9_spill]]  ;;  %s1520_s17 = sld [smem:[#allocation10_spill]] }
 0x4c3   : > { %s1521_s24 = sld [smem:[#allocation11_spill]]  ;;  %s1522_s25 = sld [smem:[#allocation12_spill]] }
 0x4c4   : > { %s1523_s26 = sld [smem:[#allocation13_spill]]  ;;  %s1524_s27 = sld [smem:[#allocation14_spill]] }
 0x4c5   : > { %s1525_s28 = sld [smem:[#allocation15_spill]]  ;;  %s1526_s29 = sld [smem:[#allocation17_spill]] }
 0x4c6   : > { %s1528_s18 = smov %s1166_s19  ;;  %s1529_s19 = smov %s1343_s15 }
 0x4c7   :  { %14 = sbr.rel (!%p1441_p8) target bundleno = 10 (0xa), region = 182 }
 0x4c8   : > { %s1530_s22 = smov %s1519_s23  ;;  %s1531_s23 = smov %s1520_s17 }

// kernel: phi2_block_forward.9
= control target key start
LH: loop header
LB: loop body
LE: loop exit
PB: predicated region body
PF: predicated region fallthrough
CT: control target
= control target key end

     0   :  { %s1240_s0 = inlined_call_operand.vmem [shape: bf16[32,512], index: 0, kind: input, shape index: {}]   ;;  %s1241_s1 = inlined_call_operand.vmem [shape: bf16[512,128], index: 1, kind: input, shape index: {}]   ;;  %s1242_s2 = inlined_call_operand.vmem [shape: f32[1,128], index: 2, kind: input, shape index: {}]   ;;  %s1243_s3 = inlined_call_operand.vmem [shape: f32[32,128], index: 3, kind: input, shape index: {}]   ;;  %s1244_s4 = inlined_call_operand.hbm [shape: f32[32,128], index: 4, kind: output, shape index: {}]  }
   0x1   :  { %1248 = sst [smem:[#allocation9_spill]] %s1240_s0 }
   0x2   :  { %9 = vsyncpa [#allocation5], 0 }
   0x3   :  { %11 = vsyncpa [#allocation5 + $0x1], 0  ;;  %s1020_s15 = smov 0   ;;  %s1022_s16 = smov 0  }
   0x4   :  { %s1024_s17 = smov 0   ;;  %s1026_s18 = smov 0  }
   0x5   :  { %s1028_s19 = smov 0   ;;  %s1030_s20 = smov 0  }
   0x6   :  { %s1032_s21 = smov 0   ;;  %s1034_s22 = smov 0  }
   0x7   :  { %s1036_s23 = smov 0   ;;  %s1038_s24 = smov 0  }
   0x8 LB: > { %s703_s25 = sadd.s32 4294967295, %s989_s24   ;;  %s704_s26 = sadd.s32 4294967294, %s989_s24   ;;  %s989_s24 = sphi %s1038_s24, %s17_s24   ;;  %s985_s23 = sphi %s1036_s23, %s1266_s23   ;;  %s981_s22 = sphi %s1034_s22, %s1265_s22   ;;  %s977_s21 = sphi %s1032_s21, %s1264_s21   ;;  %s973_s20 = sphi %s1030_s20, %s1263_s20   ;;  %s969_s19 = sphi %s1028_s19, %s1262_s19   ;;  %s965_s18 = sphi %s1026_s18, %s1261_s18   ;;  %s961_s17 = sphi %s1024_s17, %s1260_s17   ;;  %s957_s16 = sphi %s1022_s16, %s1259_s16   ;;  %s953_s15 = sphi %s1020_s15, %s1258_s15  }
   0x9   : > { %s29_s27 = sadd.s32 1, %s981_s22  ;;  %s36_s28 = sadd.s32 1, %s985_s23 }
   0xa   : > { %p30_p0 = scmp.ge.s32.totalorder %s29_s27, 2  ;;  %s45_s29 = sadd.s32 1, %s969_s19 }
   0xb   : > { %p52_p1 = scmp.ne.s32.totalorder %s969_s19, %s965_s18  ;;  %p53_p2 = scmp.eq.s32.totalorder %s989_s24, 0 }
   0xc   : > { %s1268_s27 = smov (%p30_p0, %s29_s27), 0  ;;  %s1270_s28 = smov (!%p30_p0, %s36_s28), %s985_s23 }
   0xd   : > { %1249 = sst [smem:[#allocation7_spill]] %s1268_s27  ;;  %s41_s30 = ssub.s32 %s981_s22, %s1268_s27 }
   0xe   : > { %p1083_p3 = por %p53_p2, %p52_p1  ;;  %p38_p4 = scmp.ge.s32.totalorder %s1270_s28, 2 }
   0xf   : > { %s155_s6 = sadd.s32 1, %s961_s17  ;;  %p165_p5 = scmp.ne.s32.totalorder %s961_s17, %s957_s16 }
  0x10   : > { %p166_p6 = scmp.eq.s32.totalorder %s703_s25, 3  ;;  %s1272_s28 = smov (%p38_p4, %s1270_s28), 0 }
  0x11   : > { %1251 = sst [smem:[#allocation8_spill]] %s1272_s28  ;;  %p171_p8 = scmp.ne.s32.totalorder %s957_s16, %s953_s15 }
  0x12   : > { %p1092_p7 = por %p166_p6, %p165_p5  ;;  %s40_s8 = ssub.s32 %s985_s23, %s1272_s28 }
  0x13   : > { %p172_p9 = scmp.eq.s32.totalorder %s704_s26, 3  ;;  %s42_s9 = sor.u32 %s41_s30, %s40_s8 }
  0x14   : > { %p153_p10 = scmp.eq.s32.totalorder %s40_s8, 0  ;;  %p43_p11 = scmp.eq.s32.totalorder %s42_s9, 0 }
  0x15   : > { %p1100_p12 = por %p172_p9, %p171_p8  ;;  %p707_p13 = scmp.ge.s32.totalorder %s989_s24, 4 }
  0x16   : > { %s1105_s11 = scalar_select %p153_p10, %s961_s17, %s155_s6  }
  0x17   : > { %s1108_s12 = scalar_select %p43_p11, %s969_s19, %s45_s29  }
  0x18   : > { %194 = sbr.rel (%p707_p13) target bundleno = 42 (0x2a), region = 20 }
  0x1f   : > { %197 = sbr.rel (!%p1083_p3) target bundleno = 42 (0x2a), region = 24  ;;  %s199_s13 = sand.u32 (%p1083_p3), 1, %s969_s19  }
  0x20   : > { %s710_s14 = sshll.u32 (%p1083_p3), %s981_s22, 1  ;;  %s708_s25 = sshll.u32 (%p1083_p3), %s199_s13, 4 }
  0x21   : > { %s746_s26 = sshll.u32 (%p1083_p3), %s985_s23, 3  ;;  %s1254_s0 = sld [smem:[#allocation9_spill]] (%p1083_p3) }
  0x22   : > { %s205_s30 = sadd.s32 (%p1083_p3), %s746_s26, %s710_s14  ;;  %s201_s28 = scalar_lea.vmem (%p1083_p3), [#allocation3], %s708_s25 }
  0x23   : > { %s712_s8 = sshll.u32 (%p1083_p3), %s205_s30, 2 }
  0x27   : > { %s207_s29 = scalar_lea.vmem %s1254_s0, %s712_s8 }
  0x28   : > { %v237_v0 = vld [vmem:[%s207_s29] sm:$0xff]  ;;  %v239_v1 = vld [vmem:[%s207_s29 + $0x10] sm:$0xff] }
  0x29   : > { %238 = vst [vmem:[%s201_s28] sm:$0xff] %v237_v0  ;;  %240 = vst [vmem:[%s201_s28 + $0x8] sm:$0xff] %v239_v1 }
  0x2a PF: > { %p713_p0 = scmp.ge.s32.totalorder %s989_s24, 1  ;;  %p269_p1 = scmp.lt.s32.totalorder %s989_s24, 5 }
  0x2c   : > { %p270_p2 = pnand %p713_p0, %p269_p1 }
  0x2d   : > { %s276_s5 = sand.u32 (!%p270_p2), 1, %s965_s18   ;;  %s1247_s13 = sand.u32 (!%p270_p2), 1, %s957_s16  }
  0x2e   : > { %273 = sbr.rel (%p270_p2) target bundleno = 354 (0x162), region = 70  ;;  %s1123_s14 = sshll.u32 (!%p270_p2), %s276_s5, 4 }
  0x2f   : > { %s715_s28 = sshll.u32 (!%p270_p2), %s1247_s13, 4  ;;  %s716_s25 = sshll.u32 (!%p270_p2), %s973_s20, 5 }
  0x30   : > { %s718_s26 = sshll.u32 (!%p270_p2), %s977_s21, 1  ;;  %p323_p3 = scmp.lt.s32.totalorder (!%p270_p2), %s716_s25, 63 }
  0x31   : > { %p335_p4 = scmp.lt.s32.totalorder (!%p270_p2), %s718_s26, 3  ;;  %s278_s27 = scalar_lea.vmem (!%p270_p2), [#allocation3], %s1123_s14 }
  0x32   : > { %s1140_s13 = scalar_lea.vmem (!%p270_p2), [#allocation4], %s715_s28  ;;  %p720_p5 = scmp.ne.s32.totalorder (!%p270_p2), %s973_s20, 0 }
  0x35   : > { %s1274_s25 = smov (!%p323_p3, %s716_s25), 63  ;;  %s1276_s26 = smov (!%p335_p4, %s718_s26), 3 }
  0x36   : > { %s717_s30 = sshll.u32 %s1274_s25, 2  ;;  %s719_s29 = sshll.u32 %s1276_s26, 3  ;;  %v991_v2 = vmov (!%p720_p5), 0.0  }
  0x37   : > { %s1132_s6 = scalar_lea.vmem %s1241_s1, %s717_s30  ;;  %s1137_s5 = scalar_lea.vmem %s1243_s3, %s719_s29  ;;  %349 = vst [vmem:[#allocation2] sm:$0xff] (!%p720_p5), %v991_v2  ;;  %350 = vst [vmem:[#allocation2 + $0x8] sm:$0xff] (!%p720_p5), %v991_v2 }
  0x38   : > { %348 = sbr.rel (%p720_p5) target bundleno = 63 (0x3f), region = 78 }
  0x3f PF: > { %v860_v3 = vld [vmem:[%s1132_s6 + $0x40] sm:$0xff]   ;;  %v862_v5 = vld [vmem:[%s1132_s6 + $0x48] sm:$0xff]   ;;  %v864_v7 = vld [vmem:[%s1132_s6 + $0x50] sm:$0xff]   ;;  %p739_p6 = scmp.ne.s32.totalorder %s973_s20, 1 }
  0x40   : > { %v861_v4 = vld [vmem:[%s1132_s6] sm:$0xff]   ;;  %748 = vmatprep.subr.bf16.mxu0 %v860_v3  ;;  %v863_v6 = vld [vmem:[%s1132_s6 + $0x8] sm:$0xff]   ;;  %v865_v8 = vld [vmem:[%s1132_s6 + $0x10] sm:$0xff]  }
  0x41   : > { %749 = vmatpush3.bf16.msra.mxu0 %v861_v4  ;;  %v866_v9 = vld [vmem:[%s1132_s6 + $0x58] sm:$0xff]   ;;  %v868_v11 = vld [vmem:[%s1132_s6 + $0x60] sm:$0xff]   ;;  %v870_v13 = vld [vmem:[%s1132_s6 + $0x68] sm:$0xff]  }
  0x42   : > { %750 = vmatprep.subr.bf16.mxu0 %v862_v5  ;;  %v867_v10 = vld [vmem:[%s1132_s6 + $0x18] sm:$0xff]   ;;  %v869_v12 = vld [vmem:[%s1132_s6 + $0x20] sm:$0xff]   ;;  %v871_v15 = vld [vmem:[%s1132_s6 + $0x28] sm:$0xff]  }
  0x43   : > { %v878_v14 = vld [vmem:[%s278_s27 + $0x4] ss:$8 sps:$4 sm:$0xff]   ;;  %v876_v20 = vld [vmem:[%s278_s27] ss:$8 sps:$4 sm:$0xff]  }
  0x44   : > { %525 = vmatprep.mubr.bf16.mxu0 %v878_v14  ;;  %v872_v16 = vld [vmem:[%s1132_s6 + $0x70] sm:$0xff]   ;;  %v874_v18 = vld [vmem:[%s1132_s6 + $0x78] sm:$0xff]   ;;  %v351_v22 = vld [vmem:[#allocation2] sm:$0xff] }
  0x45   : > { %751 = vmatpush3.bf16.msra.mxu0 %v863_v6  ;;  %v873_v17 = vld [vmem:[%s1132_s6 + $0x30] sm:$0xff]   ;;  %v875_v19 = vld [vmem:[%s1132_s6 + $0x38] sm:$0xff]   ;;  %v352_v26 = vld [vmem:[#allocation2 + $0x8] sm:$0xff] }
  0x46   : > { %752 = vmatprep.subr.bf16.mxu0 %v864_v7  ;;  %v740_v32 = vld [vmem:[%s1242_s2] ss:$0 sm:$0xff] (!%p739_p6)  ;;  %v554_v36 = vld [vmem:[%s1137_s5 + $0x8] sm:$0xff] (!%p739_p6) }
  0x47   : > { %v553_v33 = vld [vmem:[%s1137_s5] sm:$0xff] (!%p739_p6) }
  0x49   : > { %753 = vmatpush3.bf16.msra.mxu0 %v865_v8 }
  0x4a   : > { %754 = vmatprep.subr.bf16.mxu0 %v866_v9 }
  0x4d   : > { %755 = vmatpush3.bf16.msra.mxu0 %v867_v10 }
  0x4e   : > { %756 = vmatprep.subr.bf16.mxu0 %v868_v11 }
  0x51   : > { %757 = vmatpush3.bf16.msra.mxu0 %v869_v12 }
  0x52   : > { %758 = vmatprep.subr.bf16.mxu0 %v870_v13 }
  0x55   : > { %759 = vmatpush3.bf16.msra.mxu0 %v871_v15 }
  0x56   : > { %760 = vmatprep.subr.bf16.mxu0 %v872_v16 }
  0x59   : > { %761 = vmatpush3.bf16.msra.mxu0 %v873_v17 }
  0x5a   : > { %762 = vmatprep.subr.bf16.mxu0 %v874_v18 }
  0x5d   : > { %763 = vmatpush3.bf16.msra.mxu0 %v875_v19 }
  0x60   : > { %526 = vmatmul.mubr.bf16.vlgmr.msra.gmra.mrb[0].mxu0 %v876_v20 }
 0x133   : > { %v764_v21 = vpop.f32.mrb[0].mxu0 }
 0x134   : > { %v765_v23 = vpop.f32.mrb[1].mxu0 }
 0x135   : > { %v766_v24 = vadd.f32 %v765_v23, %v764_v21  ;;  %v767_v25 = vpop.f32.mrb[2].mxu0  ;;  %541 = sbr.rel (%p739_p6) target bundleno = 328 (0x148), region = 82 }
 0x136   : > { %v768_v27 = vpop.f32.mrb[3].mxu0 }
 0x137   : > { %v534_v28 = vadd.f32 %v766_v24, %v351_v22  ;;  %v769_v29 = vadd.f32 %v768_v27, %v767_v25 }
 0x139   : > { %536 = vst [vmem:[#allocation2] sm:$0xff] %v534_v28  ;;  %v535_v30 = vadd.f32 %v769_v29, %v352_v26 }
 0x13b   : > { %537 = vst [vmem:[#allocation2 + $0x8] sm:$0xff] %v535_v30 }
 0x140   : > { %v542_v31 = vld [vmem:[#allocation2] sm:$0xff] }
 0x141   : > { %v551_v34 = vadd.f32 %v740_v32, %v542_v31 }
 0x142   : > { %v543_v35 = vld [vmem:[#allocation2 + $0x8] sm:$0xff] }
 0x143   : > { %v552_v37 = vadd.f32 %v740_v32, %v543_v35  ;;  %v555_v38 = vadd.f32 %v553_v33, %v551_v34 }
 0x145   : > { %v556_v39 = vadd.f32 %v554_v36, %v552_v37  ;;  %557 = vst [vmem:[%s1140_s13] sm:$0xff] %v555_v38 }
 0x147   : > { %558 = vst [vmem:[%s1140_s13 + $0x8] sm:$0xff] %v556_v39 }
 0x148 PF: > { %s747_s20 = sshll.u32 %s977_s21, 8  ;;  %s574_s26 = sshll.u32 %s1140_s13, 4  ;;  %s1178_s26 = int_to_ptr.vmem [resolvable:$true] %s574_s26 }
 0x149   : > { %s1175_s25 = scalar_lea.hbm %s1244_s4, %s747_s20  ;;  %s1255_s30 = sand.u32 1, %s957_s16  }
 0x14a   : > { %s1182_s8 = scalar_lea.sflag [#allocation5], %s1255_s30  ;;  %s879_s9 = scalar_lea.vmem %s1178_s26, 256 }
 0x14b   : > { %p880_p8 = scmp.ne.s32.totalorder %s1178_s26, %s879_s9  ;;  %s992_s21 = smov [#allocation4]  }
 0x14c   : > { %s883_s6 = sshll.u32 %s992_s21, 4  ;;  %s884_s6 = int_to_ptr.vmem [resolvable:$false] %s883_s6 }
 0x14d   : > { %p881_p9 = pnand %p880_p8, %p1092_p7  ;;  %s885_s29 = scalar_lea.vmem %s884_s6, 512 }
 0x14e   : > { %p886_p11 = scmp.lt.s32.totalorder %s1178_s26, %s884_s6  ;;  %p887_p13 = scmp.lt.s32.totalorder %s885_s29, %s879_s9 }
 0x14f   : > { %p882_p10 = pneg %p881_p9 }
 0x150   : > { %p888_p0 = por %p887_p13, %p886_p11 }
 0x152   : > { %p889_p1 = pnand %p888_p0, %p882_p10 }
 0x154   : > { %892 = shalt.err (!%p889_p1)
}
 0x155   : > { %s893_s13 = scalar_lea.hbm %s1175_s25, 256  ;;  %s897_s0 = scalar_lea.hbm %s1244_s4, 512 }
 0x156   : > { %p894_p2 = scmp.ne.s32.totalorder %s1175_s25, %s893_s13  ;;  %p898_p5 = scmp.lt.u32.totalorder %s1175_s25, %s1244_s4 }
 0x157   : > { %p899_p6 = scmp.lt.u32.totalorder %s897_s0, %s893_s13  ;;  %p901_p9 = scmp.lt.u32.totalorder %s893_s13, %s1175_s25 }
 0x158   : > { %p895_p3 = pnand %p894_p2, %p1092_p7 }
 0x159   : > { %p900_p8 = por %p899_p6, %p898_p5 }
 0x15a   : > { %p896_p4 = pneg %p895_p3 }
 0x15b   : > { %p902_p10 = por %p901_p9, %p900_p8 }
 0x15d   : > { %p903_p11 = pnand %p902_p10, %p896_p4 }
 0x15f   : > { %906 = shalt.err (!%p903_p11)
}
 0x160   : > { %s993_s14 = smov 128   ;;  %s994_s28 = smov 8  }
 0x161   : > { %770 = dma.vmem_to_hbm [thread:$0]  (%p1092_p7), %s1178_s26, 256, %s1175_s25, %s1182_s8, %s993_s14, %s993_s14, %s994_s28  }
 0x162 PF: > { %p776_p13 = scmp.ge.s32.totalorder %s989_s24, 2  ;;  %s589_s30 = sand.u32 1, %s953_s15  }
 0x163   : > { %s590_s9 = scalar_lea.sflag [#allocation5], %s589_s30 }
 0x164   : > { %p773_p0 = pnand %p776_p13, %p1100_p12 }
 0x166   : > { %948 = dma.done.wait (!%p773_p0), %s590_s9, 256  }
 0x167   : > { %950 = vsyncadd (!%p773_p0), %s590_s9, 4294967040  ;;  %s17_s24 = sadd.s32 1, %s989_s24   ;;  %s1256_s7 = sld [smem:[#allocation7_spill]] }
 0x168   : > { %p14_p1 = scmp.ge.s32.totalorder %s17_s24, 6   ;;  %s1257_s25 = sld [smem:[#allocation8_spill]] }
 0x169   : > { %s1258_s15 = smov %s957_s16  ;;  %s1259_s16 = smov %s961_s17 }
 0x16a   : > { %s1260_s17 = smov %s1105_s11  ;;  %s1261_s18 = smov %s969_s19 }
 0x16b   : > { %s1262_s19 = smov %s1108_s12  ;;  %s1263_s20 = smov %s981_s22 }
 0x16c   : > { %s1264_s21 = smov %s985_s23  ;;  %16 = sbr.rel (!%p14_p1) target bundleno = 8 (0x8), region = 131 }
 0x16d   : > { %s1265_s22 = smov %s1256_s7 }
 0x16e   : > { %s1266_s23 = smov %s1257_s25 }
 0x173   :  { %595 = vsyncpa [#allocation5], 1 }
 0x174   :  { %597 = vsyncpa [#allocation5 + $0x1], 1 }

</bundles_post_ra>
